<compile_context>
chip_gen: v7x
topology: tpu7x:2x2x1
jax: 0.10.0
libtpu: 0.0.40
codegen_flags: <defaults>
</compile_context>

<pallas_src>
import functools

import jax
import jax.numpy as jnp
from jax.experimental import pallas as pl
from jax.experimental.pallas import tpu as pltpu

# Module hyper-parameters (hidden size / depth fixed in the module; state size
# comes from the env, chosen small here).
STATE_SIZE = 16
HIDDEN_SIZE = 256
HIDDEN_LAYERS = 3
OUT_PAD = 128          # final layer padded 1 -> 128 columns for lane-dense stores

BATCH = 512            # many env states per call (the big lever per review)
TILE_B = 128           # batch rows per grid step


def _value_kernel(x_ref, w1_ref, b1_ref, wh_ref, bh_ref, w2_ref, b2_ref,
                  out_ref, *, hidden_layers):
    # linear1 -> ReLU   (bf16 matmul operands, f32 accumulate, f32 elementwise)
    x = x_ref[...].astype(jnp.bfloat16)
    h = jnp.dot(x, w1_ref[...], preferred_element_type=jnp.float32)
    h = jnp.maximum(h + b1_ref[...], 0.0)

    # hidden stack: [Linear(H, H) -> ReLU] x hidden_layers
    for i in range(hidden_layers):
        h = jnp.dot(h.astype(jnp.bfloat16), wh_ref[i],
                    preferred_element_type=jnp.float32)
        h = jnp.maximum(h + bh_ref[i], 0.0)

    # final linear, zero-padded to 128 output columns -> one unmasked vst
    out = jnp.dot(h.astype(jnp.bfloat16), w2_ref[...],
                  preferred_element_type=jnp.float32)
    out_ref[...] = out + b2_ref[...]


def value_network_forward(x, kparams):
    """Returns the value estimates, shape (batch, 1), matching the PyTorch module."""
    batch, state = x.shape
    assert state == STATE_SIZE
    assert batch % TILE_B == 0, "pad the batch to a multiple of TILE_B"
    grid = (batch // TILE_B,)

    w1, b1, wh, bh, w2, b2 = (kparams["w1"], kparams["b1"], kparams["wh"],
                              kparams["bh"], kparams["w2"], kparams["b2"])

    kernel = functools.partial(_value_kernel, hidden_layers=HIDDEN_LAYERS)

    # Weights/biases use a constant block index -> loaded once, resident in
    # VMEM across all grid steps.  x / out are tiled along the batch axis.
    const = lambda i: (0, 0)
    const3 = lambda i: (0, 0, 0)
    in_specs = [
        pl.BlockSpec((TILE_B, STATE_SIZE), lambda i: (i, 0)),            # x
        pl.BlockSpec(w1.shape, const),                                   # w1
        pl.BlockSpec(b1.shape, const),                                   # b1
        pl.BlockSpec(wh.shape, const3),                                  # wh
        pl.BlockSpec(bh.shape, const3),                                  # bh
        pl.BlockSpec(w2.shape, const),                                   # w2 (padded)
        pl.BlockSpec(b2.shape, const),                                   # b2 (padded)
    ]
    out_spec = pl.BlockSpec((TILE_B, OUT_PAD), lambda i: (i, 0))

    flops = 2 * batch * (STATE_SIZE * HIDDEN_SIZE
                         + HIDDEN_LAYERS * HIDDEN_SIZE * HIDDEN_SIZE
                         + HIDDEN_SIZE * OUT_PAD)
    weight_bytes = sum(int(a.size) * a.dtype.itemsize
                       for a in (w1, b1, wh, bh, w2, b2))
    bytes_accessed = weight_bytes + x.size * 4 + batch * OUT_PAD * 4

    out_padded = pl.pallas_call(
        kernel,
        out_shape=jax.ShapeDtypeStruct((batch, OUT_PAD), jnp.float32),
        grid=grid,
        in_specs=in_specs,
        out_specs=out_spec,
        compiler_params=pltpu.CompilerParams(
            dimension_semantics=("parallel",)),
        cost_estimate=pl.CostEstimate(flops=flops, transcendentals=0,
                                      bytes_accessed=bytes_accessed),
    )(x, w1, b1, wh, bh, w2, b2)

    # Only column 0 of the padded output is the value head.
    return out_padded[:, :1]


# --------------------------------------------------------------------------
# Parameter construction (done ONCE, outside the forward hot path).
# --------------------------------------------------------------------------
def init_params_f32(key):
    """f32 parameters mimicking nn.Linear default init (U(-1/sqrt(fan_in), ...))."""
    ks = jax.random.split(key, 6)
    s, h = STATE_SIZE, HIDDEN_SIZE

    def uni(k, shape, bound):
        return jax.random.uniform(k, shape, jnp.float32, -bound, bound)

    return {
        "w1": uni(ks[0], (s, h), 1.0 / jnp.sqrt(s)),
        "b1": uni(ks[1], (h,), 1.0 / jnp.sqrt(s)),
        "wh": uni(ks[2], (HIDDEN_LAYERS, h, h), 1.0 / jnp.sqrt(h)),
        "bh": uni(ks[3], (HIDDEN_LAYERS, h), 1.0 / jnp.sqrt(h)),
        "w2": uni(ks[4], (h, 1), 1.0 / jnp.sqrt(h)),
        "b2": uni(ks[5], (1,), 1.0 / jnp.sqrt(h)),
    }


def prepare_kernel_params(p):
    """One-time prep: bf16 weights, 2-D biases, final layer zero-padded to 128 cols."""
    h = HIDDEN_SIZE
    w2p = jnp.zeros((h, OUT_PAD), jnp.float32).at[:, :1].set(p["w2"])
    b2p = jnp.zeros((1, OUT_PAD), jnp.float32).at[0, :1].set(p["b2"])
    return {
        "w1": p["w1"].astype(jnp.bfloat16),
        "b1": p["b1"].reshape(1, h),                          # f32 elementwise path
        "wh": p["wh"].astype(jnp.bfloat16),
        "bh": p["bh"].reshape(HIDDEN_LAYERS, 1, h),
        "w2": w2p.astype(jnp.bfloat16),
        "b2": b2p,
    }


# --------------------------------------------------------------------------
# References for the self-test.
# --------------------------------------------------------------------------
def _reference_matched(x, kp):
    """Pure-JAX reference with the same bf16-weight / f32-accumulate numerics."""
    h = jnp.dot(x.astype(jnp.bfloat16), kp["w1"],
                preferred_element_type=jnp.float32) + kp["b1"]
    h = jnp.maximum(h, 0.0)
    for i in range(HIDDEN_LAYERS):
        h = jnp.dot(h.astype(jnp.bfloat16), kp["wh"][i],
                    preferred_element_type=jnp.float32) + kp["bh"][i]
        h = jnp.maximum(h, 0.0)
    out = jnp.dot(h.astype(jnp.bfloat16), kp["w2"],
                  preferred_element_type=jnp.float32) + kp["b2"]
    return out[:, :1]


def _reference_exact_f32(x, p):
    """Pure-JAX f32 reference matching the PyTorch module exactly."""
    h = jnp.maximum(x @ p["w1"] + p["b1"], 0.0)
    for i in range(HIDDEN_LAYERS):
        h = jnp.maximum(h @ p["wh"][i] + p["bh"][i], 0.0)
    return h @ p["w2"] + p["b2"]


if __name__ == "__main__":
    key = jax.random.PRNGKey(0)
    k_params, k_x = jax.random.split(key)

    params_f32 = init_params_f32(k_params)
    kparams = prepare_kernel_params(params_f32)          # hoisted out of hot path
    x = jax.random.normal(k_x, (BATCH, STATE_SIZE), jnp.float32)

    values = value_network_forward(x, kparams)
    jax.block_until_ready(values)
    assert values.shape == (BATCH, 1)

    # Tight check vs a reference with identical bf16/f32 numerics.
    ref_matched = _reference_matched(x, kparams)
    assert jnp.allclose(values, ref_matched, atol=1e-3), "mismatch vs matched reference"

    # Loose check vs the exact f32 PyTorch-semantics reference
    # (bf16 weights -> small, expected deviation).
    ref_exact = _reference_exact_f32(x, params_f32)
    assert jnp.allclose(values, ref_exact, atol=5e-2), "mismatch vs f32 reference"

    print("KERNEL_OK")
</pallas_src>

<mosaic_0001>
module attributes {stable_mosaic.version = 11 : i64} {
  func.func @_value_kernel(%arg0: i32, %arg1: memref<128x16xf32, #tpu.memory_space<vmem>>, %arg2: memref<16x256xbf16, #tpu.memory_space<vmem>>, %arg3: memref<1x256xf32, #tpu.memory_space<vmem>>, %arg4: memref<3x256x256xbf16, #tpu.memory_space<vmem>>, %arg5: memref<3x1x256xf32, #tpu.memory_space<vmem>>, %arg6: memref<256x128xbf16, #tpu.memory_space<vmem>>, %arg7: memref<1x128xf32, #tpu.memory_space<vmem>>, %arg8: memref<128x128xf32, #tpu.memory_space<vmem>>) attributes {dimension_semantics = [#tpu.dimension_semantics<parallel>], iteration_bounds = array<i64: 4>, scalar_prefetch = 0 : i64, scratch_operands = 0 : i64, tpu.core_type = #tpu.core_type<tc>, window_params = [{transform_indices = @transform_0, window_bounds = array<i64: 128, 16>}, {pipeline_mode = #tpu.pipeline_mode<synchronous>, transform_indices = @transform_1, window_bounds = array<i64: 16, 256>}, {pipeline_mode = #tpu.pipeline_mode<synchronous>, transform_indices = @transform_2, window_bounds = array<i64: 1, 256>}, {pipeline_mode = #tpu.pipeline_mode<synchronous>, transform_indices = @transform_3, window_bounds = array<i64: 3, 256, 256>}, {pipeline_mode = #tpu.pipeline_mode<synchronous>, transform_indices = @transform_4, window_bounds = array<i64: 3, 1, 256>}, {pipeline_mode = #tpu.pipeline_mode<synchronous>, transform_indices = @transform_5, window_bounds = array<i64: 256, 128>}, {pipeline_mode = #tpu.pipeline_mode<synchronous>, transform_indices = @transform_6, window_bounds = array<i64: 1, 128>}, {transform_indices = @transform_7, window_bounds = array<i64: 128, 128>}]} {
    %c0 = arith.constant 0 : index
    %c0_0 = arith.constant 0 : index
    %0 = vector.load %arg1[%c0, %c0_0] : memref<128x16xf32, #tpu.memory_space<vmem>>, vector<128x16xf32>
    %1 = arith.truncf %0 : vector<128x16xf32> to vector<128x16xbf16>
    %c0_1 = arith.constant 0 : index
    %c0_2 = arith.constant 0 : index
    %2 = vector.load %arg2[%c0_1, %c0_2] : memref<16x256xbf16, #tpu.memory_space<vmem>>, vector<16x256xbf16>
    %cst = arith.constant dense<0.000000e+00> : vector<128x256xf32>
    %3 = tpu.matmul %1, %2, %cst {dimension_numbers = #tpu.dot_dimension_numbers<[1], [0], [0], [1], [0, 0, 1, 1], [], []>} : vector<128x16xbf16>, vector<16x256xbf16>, vector<128x256xf32> -> vector<128x256xf32>
    %c0_3 = arith.constant 0 : index
    %c0_4 = arith.constant 0 : index
    %4 = vector.load %arg3[%c0_3, %c0_4] : memref<1x256xf32, #tpu.memory_space<vmem>>, vector<1x256xf32>
    %5 = vector.broadcast %4 : vector<1x256xf32> to vector<128x256xf32>
    %6 = arith.addf %3, %5 : vector<128x256xf32>
    %cst_5 = arith.constant 0.000000e+00 : f32
    %7 = vector.broadcast %cst_5 : f32 to vector<128x256xf32>
    %8 = arith.maximumf %6, %7 : vector<128x256xf32>
    %9 = arith.truncf %8 : vector<128x256xf32> to vector<128x256xbf16>
    %c0_6 = arith.constant 0 : index
    %c0_7 = arith.constant 0 : index
    %c0_8 = arith.constant 0 : index
    %10 = vector.load %arg4[%c0_6, %c0_7, %c0_8] : memref<3x256x256xbf16, #tpu.memory_space<vmem>>, vector<1x256x256xbf16>
    %11 = vector.shape_cast %10 : vector<1x256x256xbf16> to vector<256x256xbf16>
    %cst_9 = arith.constant dense<0.000000e+00> : vector<128x256xf32>
    %12 = tpu.matmul %9, %11, %cst_9 {dimension_numbers = #tpu.dot_dimension_numbers<[1], [0], [0], [1], [0, 0, 1, 1], [], []>} : vector<128x256xbf16>, vector<256x256xbf16>, vector<128x256xf32> -> vector<128x256xf32>
    %c0_10 = arith.constant 0 : index
    %c0_11 = arith.constant 0 : index
    %c0_12 = arith.constant 0 : index
    %13 = vector.load %arg5[%c0_10, %c0_11, %c0_12] : memref<3x1x256xf32, #tpu.memory_space<vmem>>, vector<1x1x256xf32>
    %14 = vector.shape_cast %13 : vector<1x1x256xf32> to vector<1x256xf32>
    %15 = vector.broadcast %14 : vector<1x256xf32> to vector<128x256xf32>
    %16 = arith.addf %12, %15 : vector<128x256xf32>
    %cst_13 = arith.constant 0.000000e+00 : f32
    %17 = vector.broadcast %cst_13 : f32 to vector<128x256xf32>
    %18 = arith.maximumf %16, %17 : vector<128x256xf32>
    %19 = arith.truncf %18 : vector<128x256xf32> to vector<128x256xbf16>
    %c1 = arith.constant 1 : index
    %c0_14 = arith.constant 0 : index
    %c0_15 = arith.constant 0 : index
    %20 = vector.load %arg4[%c1, %c0_14, %c0_15] : memref<3x256x256xbf16, #tpu.memory_space<vmem>>, vector<1x256x256xbf16>
    %21 = vector.shape_cast %20 : vector<1x256x256xbf16> to vector<256x256xbf16>
    %cst_16 = arith.constant dense<0.000000e+00> : vector<128x256xf32>
    %22 = tpu.matmul %19, %21, %cst_16 {dimension_numbers = #tpu.dot_dimension_numbers<[1], [0], [0], [1], [0, 0, 1, 1], [], []>} : vector<128x256xbf16>, vector<256x256xbf16>, vector<128x256xf32> -> vector<128x256xf32>
    %c1_17 = arith.constant 1 : index
    %c0_18 = arith.constant 0 : index
    %c0_19 = arith.constant 0 : index
    %23 = vector.load %arg5[%c1_17, %c0_18, %c0_19] : memref<3x1x256xf32, #tpu.memory_space<vmem>>, vector<1x1x256xf32>
    %24 = vector.shape_cast %23 : vector<1x1x256xf32> to vector<1x256xf32>
    %25 = vector.broadcast %24 : vector<1x256xf32> to vector<128x256xf32>
    %26 = arith.addf %22, %25 : vector<128x256xf32>
    %cst_20 = arith.constant 0.000000e+00 : f32
    %27 = vector.broadcast %cst_20 : f32 to vector<128x256xf32>
    %28 = arith.maximumf %26, %27 : vector<128x256xf32>
    %29 = arith.truncf %28 : vector<128x256xf32> to vector<128x256xbf16>
    %c2 = arith.constant 2 : index
    %c0_21 = arith.constant 0 : index
    %c0_22 = arith.constant 0 : index
    %30 = vector.load %arg4[%c2, %c0_21, %c0_22] : memref<3x256x256xbf16, #tpu.memory_space<vmem>>, vector<1x256x256xbf16>
    %31 = vector.shape_cast %30 : vector<1x256x256xbf16> to vector<256x256xbf16>
    %cst_23 = arith.constant dense<0.000000e+00> : vector<128x256xf32>
    %32 = tpu.matmul %29, %31, %cst_23 {dimension_numbers = #tpu.dot_dimension_numbers<[1], [0], [0], [1], [0, 0, 1, 1], [], []>} : vector<128x256xbf16>, vector<256x256xbf16>, vector<128x256xf32> -> vector<128x256xf32>
    %c2_24 = arith.constant 2 : index
    %c0_25 = arith.constant 0 : index
    %c0_26 = arith.constant 0 : index
    %33 = vector.load %arg5[%c2_24, %c0_25, %c0_26] : memref<3x1x256xf32, #tpu.memory_space<vmem>>, vector<1x1x256xf32>
    %34 = vector.shape_cast %33 : vector<1x1x256xf32> to vector<1x256xf32>
    %35 = vector.broadcast %34 : vector<1x256xf32> to vector<128x256xf32>
    %36 = arith.addf %32, %35 : vector<128x256xf32>
    %cst_27 = arith.constant 0.000000e+00 : f32
    %37 = vector.broadcast %cst_27 : f32 to vector<128x256xf32>
    %38 = arith.maximumf %36, %37 : vector<128x256xf32>
    %39 = arith.truncf %38 : vector<128x256xf32> to vector<128x256xbf16>
    %c0_28 = arith.constant 0 : index
    %c0_29 = arith.constant 0 : index
    %40 = vector.load %arg6[%c0_28, %c0_29] : memref<256x128xbf16, #tpu.memory_space<vmem>>, vector<256x128xbf16>
    %cst_30 = arith.constant dense<0.000000e+00> : vector<128x128xf32>
    %41 = tpu.matmul %39, %40, %cst_30 {dimension_numbers = #tpu.dot_dimension_numbers<[1], [0], [0], [1], [0, 0, 1, 1], [], []>} : vector<128x256xbf16>, vector<256x128xbf16>, vector<128x128xf32> -> vector<128x128xf32>
    %c0_31 = arith.constant 0 : index
    %c0_32 = arith.constant 0 : index
    %42 = vector.load %arg7[%c0_31, %c0_32] : memref<1x128xf32, #tpu.memory_space<vmem>>, vector<1x128xf32>
    %43 = vector.broadcast %42 : vector<1x128xf32> to vector<128x128xf32>
    %44 = arith.addf %41, %43 : vector<128x128xf32>
    %c0_33 = arith.constant 0 : index
    %c0_34 = arith.constant 0 : index
    %45 = vector.load %arg8[%c0_33, %c0_34] : memref<128x128xf32, #tpu.memory_space<vmem>>, vector<128x128xf32>
    tpu.vector_store %arg8[%c0_33, %c0_34], %44 {strides = array<i32>} : memref<128x128xf32, #tpu.memory_space<vmem>>, vector<128x128xf32>,
    return
  }
  func.func @transform_0(%arg0: i32) -> (i32, i32) {
    %c0_i32 = arith.constant 0 : i32
    %c0_i32_0 = arith.constant 0 : i32
    return %arg0, %c0_i32 : i32, i32
  }
  func.func @transform_1(%arg0: i32) -> (i32, i32) {
    %c0_i32 = arith.constant 0 : i32
    %c0_i32_0 = arith.constant 0 : i32
    %c0_i32_1 = arith.constant 0 : i32
    return %c0_i32, %c0_i32_0 : i32, i32
  }
  func.func @transform_2(%arg0: i32) -> (i32, i32) {
    %c0_i32 = arith.constant 0 : i32
    %c0_i32_0 = arith.constant 0 : i32
    %c0_i32_1 = arith.constant 0 : i32
    return %c0_i32, %c0_i32_0 : i32, i32
  }
  func.func @transform_3(%arg0: i32) -> (i32, i32, i32) {
    %c0_i32 = arith.constant 0 : i32
    %c0_i32_0 = arith.constant 0 : i32
    %c0_i32_1 = arith.constant 0 : i32
    %c0_i32_2 = arith.constant 0 : i32
    return %c0_i32, %c0_i32_0, %c0_i32_1 : i32, i32, i32
  }
  func.func @transform_4(%arg0: i32) -> (i32, i32, i32) {
    %c0_i32 = arith.constant 0 : i32
    %c0_i32_0 = arith.constant 0 : i32
    %c0_i32_1 = arith.constant 0 : i32
    %c0_i32_2 = arith.constant 0 : i32
    return %c0_i32, %c0_i32_0, %c0_i32_1 : i32, i32, i32
  }
  func.func @transform_5(%arg0: i32) -> (i32, i32) {
    %c0_i32 = arith.constant 0 : i32
    %c0_i32_0 = arith.constant 0 : i32
    %c0_i32_1 = arith.constant 0 : i32
    return %c0_i32, %c0_i32_0 : i32, i32
  }
  func.func @transform_6(%arg0: i32) -> (i32, i32) {
    %c0_i32 = arith.constant 0 : i32
    %c0_i32_0 = arith.constant 0 : i32
    %c0_i32_1 = arith.constant 0 : i32
    return %c0_i32, %c0_i32_0 : i32, i32
  }
  func.func @transform_7(%arg0: i32) -> (i32, i32) {
    %c0_i32 = arith.constant 0 : i32
    %c0_i32_0 = arith.constant 0 : i32
    return %arg0, %c0_i32 : i32, i32
  }
}

</mosaic_0001>

<bundles_post_ra>
// kernel: tpu_custom_call.1
= control target key start
LH: loop header
LB: loop body
LE: loop exit
PB: predicated region body
PF: predicated region fallthrough
CT: control target
= control target key end

     0   :  { %12 = vsyncpa [#allocation3], 0  ;;  %s2967_s0 = inlined_call_operand.vmem [shape: f32[512,16], index: 0, kind: input, shape index: {}]   ;;  %s2968_s1 = inlined_call_operand.vmem [shape: bf16[16,256], index: 1, kind: input, shape index: {}]   ;;  %s2969_s2 = inlined_call_operand.vmem [shape: f32[1,256], index: 2, kind: input, shape index: {}]   ;;  %s2970_s3 = inlined_call_operand.hbm [shape: bf16[3,256,256], index: 3, kind: input, shape index: {}]   ;;  %s2971_s4 = inlined_call_operand.vmem [shape: f32[3,1,256], index: 4, kind: input, shape index: {}]   ;;  %s2972_s5 = inlined_call_operand.vmem [shape: bf16[256,128], index: 5, kind: input, shape index: {}]   ;;  %s2973_s6 = inlined_call_operand.vmem [shape: f32[1,128], index: 6, kind: input, shape index: {}]   ;;  %s2974_s7 = inlined_call_operand.hbm [shape: f32[512,128], index: 7, kind: output, shape index: {}]  }
   0x1   :  { %13 = vsyncpa [#allocation4], 0 }
   0x2   :  { %15 = vsyncpa [#allocation4 + $0x1], 0  ;;  %s2530_s24 = smov 0   ;;  %s2532_s25 = smov 0  }
   0x3   :  { %s2534_s26 = smov 0   ;;  %s2536_s27 = smov 0  }
   0x4 LB: > { %s2551_s28 = sadd.s32 4294967295, %s2481_s27   ;;  %s1965_s29 = sadd.s32 4294967294, %s2481_s27   ;;  %s2481_s27 = sphi %s2536_s27, %s2990_s27   ;;  %s2477_s26 = sphi %s2534_s26, %s2989_s26   ;;  %s2473_s25 = sphi %s2532_s25, %s2988_s25   ;;  %s2469_s24 = sphi %s2530_s24, %s2987_s24  }
   0x5   : > { %s2555_s30 = sadd.s32 1, %s2481_s27   ;;  %s180_s8 = sadd.s32 1, %s2477_s26 }
   0x6   : > { %s177_s9 = ssub.s32 %s2481_s27, %s2555_s30  ;;  %p190_p0 = scmp.ne.s32.totalorder %s2477_s26, %s2473_s25 }
   0x7   : > { %p178_p1 = scmp.eq.s32.totalorder %s177_s9, 0  ;;  %p191_p2 = scmp.eq.s32.totalorder %s2551_s28, 3 }
   0x8   : > { %p196_p3 = scmp.ne.s32.totalorder %s2473_s25, %s2469_s24  ;;  %p197_p4 = scmp.eq.s32.totalorder %s1965_s29, 3 }
   0x9   : > { %s2566_s10 = scalar_select %p178_p1, %s2477_s26, %s180_s8  }
   0xa   : > { %p2568_p5 = por %p191_p2, %p190_p0  ;;  %p2572_p6 = por %p197_p4, %p196_p3 }
   0xb   : > { %p1966_p7 = scmp.ge.s32.totalorder %s2481_s27, 1  ;;  %p204_p8 = scmp.lt.s32.totalorder %s2481_s27, 5 }
   0xc   : > { %s2978_s11 = scalar_select %p2568_p5, 1, 0 }
   0xd   : > { %s2979_s12 = scalar_select %p2572_p6, 1, 0 }
   0xe   : > { %p2975_p9 = scmp.eq.s32.totalorder %s2551_s28, 0  ;;  %p2579_p10 = pnand %p1966_p7, %p204_p8 }
   0xf   : > { %s2483_s14 = smov [#allocation2]   ;;  %s2387_s19 = scalar_lea.hbm %s2970_s3, 12288 }
  0x10   : > { %s2980_s13 = scalar_select %p2579_p10, 1, 0 }
  0x11   : > { %s222_s15 = sshll.u32 %s2483_s14, 4  ;;  %p2175_p11 = pneg %p2579_p10  ;;  %s223_s15 = int_to_ptr.vmem [resolvable:$true] %s222_s15 }
  0x12   : > { %p2388_p13 = scmp.ne.s32.totalorder %s2970_s3, %s2387_s19  ;;  %p2394_p3 = scmp.lt.u32.totalorder %s2387_s19, %s2970_s3 }
  0x13   : > { %p2587_p12 = pnand %p2975_p9, %p2175_p11 }
  0x15   : > { %p2389_p0 = pneg %p2587_p12 }
  0x17   : > { %p2390_p1 = pnand %p2389_p0, %p2388_p13 }
  0x19   : > { %p2391_p2 = pneg %p2390_p1 }
  0x1b   : > { %p2396_p4 = pnand %p2394_p3, %p2391_p2 }
  0x1d   : > { %2399 = shalt.err (!%p2396_p4)
}
  0x1e   : > { %s2400_s29 = scalar_lea.vmem %s223_s15, 12288  ;;  %p2408_p9 = scmp.lt.s32.totalorder %s223_s15, %s223_s15 }
  0x1f   : > { %p2401_p7 = scmp.ne.s32.totalorder %s223_s15, %s2400_s29  ;;  %p2409_p6 = scmp.lt.s32.totalorder %s2400_s29, %s2400_s29 }
  0x21   : > { %p2403_p8 = pnand %p2401_p7, %p2389_p0  ;;  %p2410_p5 = por %p2409_p6, %p2408_p9 }
  0x23   : > { %p2404_p11 = pneg %p2403_p8 }
  0x25   : > { %p2411_p10 = pnand %p2410_p5, %p2404_p11 }
  0x27   : > { %2414 = shalt.err (!%p2411_p10)
}
  0x28   : > { %s2484_s8 = smov 128   ;;  %s2485_s9 = smov 8  }
  0x29   : > { %2178 = dma.hbm_to_vmem [thread:$0]  (!%p2587_p12), %s2970_s3, 12288, %s223_s15, [#allocation3], %s2484_s8, %s2484_s8, %s2485_s9  }
  0x2a   : > { %p2982_p13 = scmp.ne.s32.totalorder %s2980_s13, 0 }
  0x2b   : > { %p2983_p1 = scmp.eq.s32.totalorder (!%p2982_p13), %s2551_s28, 0 }
  0x2c   : > { %256 = sbr.rel (%p2982_p13) target bundleno = 1239 (0x4d7), region = 48 }
  0x33   : > { %2460 = dma.done.wait (%p2983_p1), [#allocation3], 12288   ;;  %p2984_p0 = pmov %p2983_p1 }
  0x34   : > { %s1972_s18 = sshll.u32 %s2551_s28, 4  ;;  %v2486_v0 = vmov 0   ;;  %v2224_v1 = vld [vmem:[%s2968_s1 + $0x4] ss:$8 sps:$4 sm:$0xff]   ;;  %v2226_v2 = vld [vmem:[%s2968_s1] ss:$8 sps:$4 sm:$0xff]  }
  0x35   : > { %2462 = vsyncadd (%p2984_p0), [#allocation3], 4294955008  ;;  %401 = vmatprep.mubr.bf16.mxu0 %v2486_v0  ;;  %p289_p5 = scmp.lt.s32.totalorder %s1972_s18, 63  ;;  %369 = vmatprep.subr.bf16.mxu0 %v2224_v1  ;;  %vm344_vm0 = vcmask 130048   ;;  %v2227_v8 = vld [vmem:[#allocation2 + $0x4] ss:$8 sps:$4 sm:$0xff]  }
  0x36   : > { %370 = vmatpush1.bf16.msra.mxu0 %v2226_v2  ;;  %v2229_v9 = vld [vmem:[#allocation2] ss:$8 sps:$4 sm:$0xff]   ;;  %v2230_v10 = vld [vmem:[#allocation2 + $0x14] ss:$8 sps:$4 sm:$0xff]   ;;  %734 = vmatprep.subr.bf16.mxu1 %v2227_v8  ;;  %v2232_v12 = vld [vmem:[#allocation2 + $0x10] ss:$8 sps:$4 sm:$0xff]  }
  0x37   : > { %s2992_s18 = smov (!%p289_p5, %s1972_s18), 63  ;;  %735 = vmatpush1.bf16.msra.mxu1 %v2229_v9  ;;  %v2233_v13 = vld [vmem:[#allocation2 + $0x24] ss:$8 sps:$4 sm:$0xff]   ;;  %v2235_v15 = vld [vmem:[#allocation2 + $0x20] ss:$8 sps:$4 sm:$0xff]   ;;  %s285_s22 = sand.u32 1, %s2473_s25  }
  0x38   : > { %s1973_s16 = sshll.u32 %s2992_s18, 3  ;;  %736 = vmatprep.subr.bf16.mxu1 %v2230_v10  ;;  %v2236_v17 = vld [vmem:[#allocation2 + $0x34] ss:$8 sps:$4 sm:$0xff]   ;;  %v2238_v19 = vld [vmem:[#allocation2 + $0x30] ss:$8 sps:$4 sm:$0xff]   ;;  %s1971_s23 = sshll.u32 %s285_s22, 7 }
  0x39   : > { %s2618_s15 = scalar_lea.vmem %s2967_s0, %s1973_s16  ;;  %v2239_v20 = vld [vmem:[#allocation2 + $0x44] ss:$8 sps:$4 sm:$0xff]   ;;  %v2241_v22 = vld [vmem:[#allocation2 + $0x40] ss:$8 sps:$4 sm:$0xff]   ;;  %v2242_v24 = vld [vmem:[#allocation2 + $0x54] ss:$8 sps:$4 sm:$0xff]  }
  0x3a   : > { %v296_v3 = vld [vmem:[%s2618_s15] sm:$0xff]  ;;  %v297_v4 = vld [vmem:[%s2618_s15 + $0x8] sm:$0xff]  ;;  %v298_v6 = vld [vmem:[%s2618_s15 + $0x10] sm:$0xff]  ;;  %s2882_s9 = scalar_lea.vmem [#allocation5], %s1971_s23  ;;  %s2104_s14 = sshll.u32 %s2551_s28, 11 }
  0x3b   : > { %v312_v5 = vpack.c.bf16 %v297_v4, %v296_v3  ;;  %v299_v7 = vld [vmem:[%s2618_s15 + $0x18] sm:$0xff]  ;;  %v300_v14 = vld [vmem:[%s2618_s15 + $0x20] sm:$0xff]  ;;  %737 = vmatpush1.bf16.msra.mxu1 %v2232_v12  ;;  %v301_v16 = vld [vmem:[%s2618_s15 + $0x28] sm:$0xff]  ;;  %s1891_s17 = sshll.u32 %s2882_s9, 4  ;;  %s2917_s19 = scalar_lea.hbm %s2974_s7, %s2104_s14  ;;  %s2919_s17 = int_to_ptr.vmem [resolvable:$true] %s1891_s17 }
  0x3c   : > { %v313_v11 = vpack.c.bf16 %v299_v7, %v298_v6  ;;  %738 = vmatprep.subr.bf16.mxu1 %v2233_v13  ;;  %v314_v18 = vpack.c.bf16 %v301_v16, %v300_v14  ;;  %v302_v21 = vld [vmem:[%s2618_s15 + $0x30] sm:$0xff]  ;;  %v303_v23 = vld [vmem:[%s2618_s15 + $0x38] sm:$0xff]  ;;  %v2245_v26 = vld [vmem:[#allocation2 + $0x64] ss:$8 sps:$4 sm:$0xff]   ;;  %s2926_s28 = scalar_lea.sflag [#allocation4], %s285_s22  ;;  %s2415_s20 = scalar_lea.vmem %s2919_s17, 2048 }
  0x3d   : > { %1976 = vmatmul.mubr.msk.bf16.vlgmr.msra.gmra.mrb[0].mxu0 %vm344_vm0, %v312_v5  ;;  %v2244_v25 = vld [vmem:[#allocation2 + $0x50] ss:$8 sps:$4 sm:$0xff]   ;;  %v315_v27 = vpack.c.bf16 %v303_v23, %v302_v21  ;;  %v2247_v28 = vld [vmem:[#allocation2 + $0x60] ss:$8 sps:$4 sm:$0xff]   ;;  %v2248_v31 = vld [vmem:[#allocation2 + $0x74] ss:$8 sps:$4 sm:$0xff]   ;;  %p2416_p6 = scmp.ne.s32.totalorder %s2919_s17, %s2415_s20 }
  0x3e   : > { %411 = vmatprep.mubr.bf16.mxu0 %v2486_v0  ;;  %v304_v29 = vld [vmem:[%s2618_s15 + $0x40] sm:$0xff]  ;;  %v305_v30 = vld [vmem:[%s2618_s15 + $0x48] sm:$0xff]  ;;  %v2250_v32 = vld [vmem:[#allocation2 + $0x70] ss:$8 sps:$4 sm:$0xff]   ;;  %p2985_p9 = scmp.ne.s32.totalorder %s2978_s11, 0 }
  0x3f   : > { %739 = vmatpush1.bf16.msra.mxu1 %v2235_v15  ;;  %v2251_v33 = vld [vmem:[#allocation2 + $0x84] ss:$8 sps:$4 sm:$0xff]   ;;  %v316_v34 = vpack.c.bf16 %v305_v30, %v304_v29  ;;  %v2253_v35 = vld [vmem:[#allocation2 + $0x80] ss:$8 sps:$4 sm:$0xff]   ;;  %v306_v36 = vld [vmem:[%s2618_s15 + $0x50] sm:$0xff] }
  0x40   : > { %740 = vmatprep.subr.bf16.mxu1 %v2236_v17  ;;  %v307_v37 = vld [vmem:[%s2618_s15 + $0x58] sm:$0xff]  ;;  %v2257_v40 = vld [vmem:[#allocation2 + $0xa4] ss:$8 sps:$4 sm:$0xff]   ;;  %v2259_v42 = vld [vmem:[#allocation2 + $0xa0] ss:$8 sps:$4 sm:$0xff]   ;;  %p2417_p10 = pnand %p2416_p6, %p2985_p9 }
  0x41   : > { %v2254_v38 = vld [vmem:[#allocation2 + $0x94] ss:$8 sps:$4 sm:$0xff]   ;;  %v2256_v39 = vld [vmem:[#allocation2 + $0x90] ss:$8 sps:$4 sm:$0xff]   ;;  %v317_v41 = vpack.c.bf16 %v307_v37, %v306_v36  ;;  %v308_v43 = vld [vmem:[%s2618_s15 + $0x60] sm:$0xff] }
  0x42   : > { %v309_v44 = vld [vmem:[%s2618_s15 + $0x68] sm:$0xff]  ;;  %v2260_v45 = vld [vmem:[#allocation2 + $0xb4] ss:$8 sps:$4 sm:$0xff]   ;;  %v2262_v46 = vld [vmem:[#allocation2 + $0xb0] ss:$8 sps:$4 sm:$0xff]   ;;  %p2418_p12 = pneg %p2417_p10 }
  0x43   : > { %741 = vmatpush1.bf16.msra.mxu1 %v2238_v19  ;;  %v2263_v47 = vld [vmem:[#allocation2 + $0xc4] ss:$8 sps:$4 sm:$0xff]   ;;  %v318_v48 = vpack.c.bf16 %v309_v44, %v308_v43  ;;  %v2265_v49 = vld [vmem:[#allocation2 + $0xc0] ss:$8 sps:$4 sm:$0xff]   ;;  %v310_v50 = vld [vmem:[%s2618_s15 + $0x70] sm:$0xff] }
  0x44   : > { %742 = vmatprep.subr.bf16.mxu1 %v2239_v20  ;;  %v311_v51 = vld [vmem:[%s2618_s15 + $0x78] sm:$0xff]  ;;  %v2269_v55 = vld [vmem:[#allocation2 + $0xe4] ss:$8 sps:$4 sm:$0xff]   ;;  %v2271_v56 = vld [vmem:[#allocation2 + $0xe0] ss:$8 sps:$4 sm:$0xff]   ;;  %v324_v20 = vlaneseq  ;;  %s2487_s15 = smov [#allocation5]  }
  0x45   : > { %1977 = vmatmul.mubr.msk.bf16.gmra.mrb[4].mxu0 %vm344_vm0, %v313_v11  ;;  %v2266_v52 = vld [vmem:[#allocation2 + $0xd4] ss:$8 sps:$4 sm:$0xff]   ;;  %v319_v53 = vpack.c.bf16 %v311_v51, %v310_v50  ;;  %v2268_v54 = vld [vmem:[#allocation2 + $0xd0] ss:$8 sps:$4 sm:$0xff]   ;;  %v2275_v59 = vld [vmem:[#allocation2 + $0x100] ss:$8 sps:$4 sm:$0xff]  }
  0x46   : > { %421 = vmatprep.mubr.bf16.mxu0 %v2486_v0  ;;  %v2272_v57 = vld [vmem:[#allocation2 + $0xf4] ss:$8 sps:$4 sm:$0xff]   ;;  %v2274_v58 = vld [vmem:[#allocation2 + $0xf0] ss:$8 sps:$4 sm:$0xff]   ;;  %v2277_v60 = vld [vmem:[#allocation2 + $0x104] ss:$8 sps:$4 sm:$0xff]  }
  0x47   : > { %743 = vmatpush1.bf16.msra.mxu1 %v2241_v22  ;;  %v2280_v61 = vld [vmem:[#allocation2 + $0x114] ss:$8 sps:$4 sm:$0xff]   ;;  %1101 = vmatprep.subr.bf16.mxu0 %v2277_v60  ;;  %v2278_v62 = vld [vmem:[#allocation2 + $0x110] ss:$8 sps:$4 sm:$0xff]   ;;  %v2283_v63 = vld [vmem:[#allocation2 + $0x124] ss:$8 sps:$4 sm:$0xff]  }
  0x48   : > { %744 = vmatprep.subr.bf16.mxu1 %v2242_v24  ;;  %1102 = vmatpush1.bf16.msra.mxu0 %v2275_v59  ;;  %v2286_v1 = vld [vmem:[#allocation2 + $0x134] ss:$8 sps:$4 sm:$0xff]   ;;  %v2284_v2 = vld [vmem:[#allocation2 + $0x130] ss:$8 sps:$4 sm:$0xff]   ;;  %v2289_v3 = vld [vmem:[#allocation2 + $0x144] ss:$8 sps:$4 sm:$0xff]  }
  0x49   : > { %1103 = vmatprep.subr.bf16.mxu0 %v2280_v61  ;;  %v2287_v4 = vld [vmem:[#allocation2 + $0x140] ss:$8 sps:$4 sm:$0xff]   ;;  %v2292_v5 = vld [vmem:[#allocation2 + $0x154] ss:$8 sps:$4 sm:$0xff]   ;;  %v2290_v6 = vld [vmem:[#allocation2 + $0x150] ss:$8 sps:$4 sm:$0xff]  }
  0x4a   : > { %v2295_v7 = vld [vmem:[#allocation2 + $0x164] ss:$8 sps:$4 sm:$0xff]   ;;  %v2293_v8 = vld [vmem:[#allocation2 + $0x160] ss:$8 sps:$4 sm:$0xff]   ;;  %v2298_v9 = vld [vmem:[#allocation2 + $0x174] ss:$8 sps:$4 sm:$0xff]  }
  0x4b   : > { %745 = vmatpush1.bf16.msra.mxu1 %v2244_v25  ;;  %v2296_v10 = vld [vmem:[#allocation2 + $0x170] ss:$8 sps:$4 sm:$0xff]   ;;  %v2301_v11 = vld [vmem:[#allocation2 + $0x184] ss:$8 sps:$4 sm:$0xff]   ;;  %v2299_v12 = vld [vmem:[#allocation2 + $0x180] ss:$8 sps:$4 sm:$0xff]  }
  0x4c   : > { %746 = vmatprep.subr.bf16.mxu1 %v2245_v26  ;;  %1104 = vmatpush1.bf16.msra.mxu0 %v2278_v62  ;;  %v2304_v13 = vld [vmem:[#allocation2 + $0x194] ss:$8 sps:$4 sm:$0xff]   ;;  %v2302_v14 = vld [vmem:[#allocation2 + $0x190] ss:$8 sps:$4 sm:$0xff]   ;;  %v2307_v15 = vld [vmem:[#allocation2 + $0x1a4] ss:$8 sps:$4 sm:$0xff]  }
  0x4d   : > { %1978 = vmatmul.mubr.msk.bf16.gmra.mrb[8].mxu0 %vm344_vm0, %v314_v18  ;;  %1105 = vmatprep.subr.bf16.mxu0 %v2283_v63  ;;  %v2305_v16 = vld [vmem:[#allocation2 + $0x1a0] ss:$8 sps:$4 sm:$0xff]   ;;  %v2310_v17 = vld [vmem:[#allocation2 + $0x1b4] ss:$8 sps:$4 sm:$0xff]   ;;  %v2308_v18 = vld [vmem:[#allocation2 + $0x1b0] ss:$8 sps:$4 sm:$0xff]  }
  0x4e   : > { %431 = vmatprep.mubr.bf16.mxu0 %v2486_v0  ;;  %v2313_v19 = vld [vmem:[#allocation2 + $0x1c4] ss:$8 sps:$4 sm:$0xff]   ;;  %v2311_v21 = vld [vmem:[#allocation2 + $0x1c0] ss:$8 sps:$4 sm:$0xff]   ;;  %v2316_v22 = vld [vmem:[#allocation2 + $0x1d4] ss:$8 sps:$4 sm:$0xff]  }
  0x4f   : > { %747 = vmatpush1.bf16.msra.mxu1 %v2247_v28  ;;  %v325_v23 = vshrl.u32 %v324_v20, 7  ;;  %v2314_v24 = vld [vmem:[#allocation2 + $0x1d0] ss:$8 sps:$4 sm:$0xff]   ;;  %v322_v26 = vld [vmem:[%s2969_s2] sm:$0x3]  ;;  %s2419_s13 = sshll.u32 %s2487_s15, 4  ;;  %s2420_s13 = int_to_ptr.vmem [resolvable:$false] %s2419_s13 }
  0x50   : > { %748 = vmatprep.subr.bf16.mxu1 %v2248_v31  ;;  %s2421_s21 = scalar_lea.vmem %s2420_s13, 4096  ;;  %p2422_p2 = scmp.lt.s32.totalorder %s2919_s17, %s2420_s13 }
  0x51   : > { %v2657_v25 = vsub.s32 0, %v325_v23  ;;  %p2423_p3 = scmp.lt.s32.totalorder %s2421_s21, %s2415_s20 }
  0x53   : > { %749 = vmatpush1.bf16.msra.mxu1 %v2250_v32  ;;  %v2665_v28 = vrot.slane %v322_v26, %v2657_v25  ;;  %p2424_p4 = por %p2423_p3, %p2422_p2 }
  0x54   : > { %750 = vmatprep.subr.bf16.mxu1 %v2251_v33 }
  0x55   : > { %1979 = vmatmul.mubr.msk.bf16.gmra.mrb[12].mxu0 %vm344_vm0, %v315_v27  ;;  %v2662_v27 = vsub.s32 1, %v325_v23  ;;  %p2425_p7 = pnand %p2424_p4, %p2418_p12 }
  0x56   : > { %441 = vmatprep.mubr.bf16.mxu0 %v2486_v0 }
  0x57   : > { %751 = vmatpush1.bf16.msra.mxu1 %v2253_v35  ;;  %v2668_v29 = vrot.slane %v322_v26, %v2662_v27 }
  0x58   : > { %752 = vmatprep.subr.bf16.mxu1 %v2254_v38 }
  0x5b   : > { %753 = vmatpush1.bf16.msra.mxu1 %v2256_v39 }
  0x5c   : > { %754 = vmatprep.subr.bf16.mxu1 %v2257_v40 }
  0x5d   : > { %1980 = vmatmul.mubr.msk.bf16.gmra.mrb[16].mxu0 %vm344_vm0, %v316_v34 }
  0x5e   : > { %451 = vmatprep.mubr.bf16.mxu0 %v2486_v0 }
  0x5f   : > { %755 = vmatpush1.bf16.msra.mxu1 %v2259_v42 }
  0x60   : > { %756 = vmatprep.subr.bf16.mxu1 %v2260_v45 }
  0x63   : > { %757 = vmatpush1.bf16.msra.mxu1 %v2262_v46 }
  0x64   : > { %758 = vmatprep.subr.bf16.mxu1 %v2263_v47 }
  0x65   : > { %1981 = vmatmul.mubr.msk.bf16.gmra.mrb[20].mxu0 %vm344_vm0, %v317_v41 }
  0x66   : > { %461 = vmatprep.mubr.bf16.mxu0 %v2486_v0 }
  0x67   : > { %759 = vmatpush1.bf16.msra.mxu1 %v2265_v49 }
  0x68   : > { %760 = vmatprep.subr.bf16.mxu1 %v2266_v52 }
  0x6b   : > { %761 = vmatpush1.bf16.msra.mxu1 %v2268_v54 }
  0x6c   : > { %762 = vmatprep.subr.bf16.mxu1 %v2269_v55 }
  0x6d   : > { %1982 = vmatmul.mubr.msk.bf16.gmra.mrb[24].mxu0 %vm344_vm0, %v318_v48 }
  0x6e   : > { %471 = vmatprep.mubr.bf16.mxu0 %v2486_v0  ;;  %v2281_v0 = vld [vmem:[#allocation2 + $0x120] ss:$8 sps:$4 sm:$0xff]  }
  0x6f   : > { %763 = vmatpush1.bf16.msra.mxu1 %v2271_v56  ;;  %1106 = vmatpush1.bf16.msra.mxu0 %v2281_v0 }
  0x70   : > { %764 = vmatprep.subr.bf16.mxu1 %v2272_v57  ;;  %1107 = vmatprep.subr.bf16.mxu0 %v2286_v1 }
  0x73   : > { %765 = vmatpush1.bf16.msra.mxu1 %v2274_v58  ;;  %1108 = vmatpush1.bf16.msra.mxu0 %v2284_v2 }
  0x74   : > { %1109 = vmatprep.subr.bf16.mxu0 %v2289_v3 }
  0x75   : > { %1983 = vmatmul.mubr.msk.bf16.gmra.mrb[28].mxu0 %vm344_vm0, %v319_v53 }
  0x77   : > { %1110 = vmatpush1.bf16.msra.mxu0 %v2287_v4 }
  0x78   : > { %1111 = vmatprep.subr.bf16.mxu0 %v2292_v5 }
  0x7b   : > { %1112 = vmatpush1.bf16.msra.mxu0 %v2290_v6 }
  0x7c   : > { %1113 = vmatprep.subr.bf16.mxu0 %v2295_v7 }
  0x7f   : > { %1114 = vmatpush1.bf16.msra.mxu0 %v2293_v8 }
  0x80   : > { %1115 = vmatprep.subr.bf16.mxu0 %v2298_v9 }
  0x83   : > { %1116 = vmatpush1.bf16.msra.mxu0 %v2296_v10 }
  0x84   : > { %1117 = vmatprep.subr.bf16.mxu0 %v2301_v11 }
  0x87   : > { %1118 = vmatpush1.bf16.msra.mxu0 %v2299_v12 }
  0x88   : > { %1119 = vmatprep.subr.bf16.mxu0 %v2304_v13 }
  0x8b   : > { %1120 = vmatpush1.bf16.msra.mxu0 %v2302_v14 }
  0x8c   : > { %1121 = vmatprep.subr.bf16.mxu0 %v2307_v15 }
  0x8f   : > { %1122 = vmatpush1.bf16.msra.mxu0 %v2305_v16 }
  0x90   : > { %1123 = vmatprep.subr.bf16.mxu0 %v2310_v17 }
  0x93   : > { %1124 = vmatpush1.bf16.msra.mxu0 %v2308_v18 }
  0x94   : > { %1125 = vmatprep.subr.bf16.mxu0 %v2313_v19 }
  0x97   : > { %1126 = vmatpush1.bf16.msra.mxu0 %v2311_v21 }
  0x98   : > { %1127 = vmatprep.subr.bf16.mxu0 %v2316_v22 }
  0x9b   : > { %1128 = vmatpush1.bf16.msra.mxu0 %v2314_v24 }
 0x110   : > { %v403_v30 = vpop.f32.mrb[0].mxu0 }
 0x111   : > { %v404_v31 = vadd.f32 %v403_v30, %v2665_v28  ;;  %v405_v32 = vpop.f32.mrb[1].mxu0 }
 0x112   : > { %v406_v33 = vadd.f32 %v405_v32, %v2668_v29  ;;  %v407_v34 = vpop.f32.mrb[2].mxu0 }
 0x113   : > { %v408_v35 = vadd.f32 %v407_v34, %v2665_v28  ;;  %v409_v36 = vpop.f32.mrb[3].mxu0  ;;  %v482_v38 = vmax.f32 %v404_v31, 0.0 }
 0x114   : > { %v410_v37 = vadd.f32 %v409_v36, %v2668_v29  ;;  %v483_v40 = vmax.f32 %v406_v33, 0.0 }
 0x115   : > { %v484_v39 = vmax.f32 %v408_v35, 0.0 }
 0x116   : > { %v485_v41 = vmax.f32 %v410_v37, 0.0 }
 0x117   : > { %v514_v42 = vpack.c.bf16 %v484_v39, %v482_v38 }
 0x118   : > { %v413_v43 = vpop.f32.mrb[4].mxu0  ;;  %v515_v44 = vpack.c.bf16 %v485_v41, %v483_v40 }
 0x119   : > { %v414_v45 = vadd.f32 %v413_v43, %v2665_v28  ;;  %v415_v46 = vpop.f32.mrb[5].mxu0 }
 0x11a   : > { %v416_v47 = vadd.f32 %v415_v46, %v2668_v29  ;;  %v417_v48 = vpop.f32.mrb[6].mxu0  ;;  %766 = vmatprep.mubr.bf16.mxu1 %v515_v44 }
 0x11b   : > { %v418_v49 = vadd.f32 %v417_v48, %v2665_v28  ;;  %v419_v50 = vpop.f32.mrb[7].mxu0  ;;  %767 = vmatmul.mubr.bf16.vlgmr.msra.gmra.mrb[0].mxu1 %v514_v42  ;;  %v486_v52 = vmax.f32 %v414_v45, 0.0 }
 0x11c   : > { %v420_v51 = vadd.f32 %v419_v50, %v2668_v29  ;;  %v487_v54 = vmax.f32 %v416_v47, 0.0 }
 0x11d   : > { %v488_v53 = vmax.f32 %v418_v49, 0.0 }
 0x11e   : > { %v489_v55 = vmax.f32 %v420_v51, 0.0 }
 0x11f   : > { %v516_v56 = vpack.c.bf16 %v488_v53, %v486_v52 }
 0x120   : > { %v517_v57 = vpack.c.bf16 %v489_v55, %v487_v54  ;;  %v423_v58 = vpop.f32.mrb[8].mxu0 }
 0x121   : > { %v424_v59 = vadd.f32 %v423_v58, %v2665_v28  ;;  %v425_v60 = vpop.f32.mrb[9].mxu0 }
 0x122   : > { %v426_v61 = vadd.f32 %v425_v60, %v2668_v29  ;;  %v427_v62 = vpop.f32.mrb[10].mxu0  ;;  %776 = vmatprep.mubr.bf16.mxu1 %v517_v57 }
 0x123   : > { %v428_v63 = vadd.f32 %v427_v62, %v2665_v28  ;;  %v429_v0 = vpop.f32.mrb[11].mxu0  ;;  %777 = vmatmul.mubr.bf16.gmra.mrb[4].mxu1 %v516_v56  ;;  %v490_v2 = vmax.f32 %v424_v59, 0.0 }
 0x124   : > { %v430_v1 = vadd.f32 %v429_v0, %v2668_v29  ;;  %v491_v4 = vmax.f32 %v426_v61, 0.0 }
 0x125   : > { %v492_v3 = vmax.f32 %v428_v63, 0.0 }
 0x126   : > { %v493_v5 = vmax.f32 %v430_v1, 0.0 }
 0x127   : > { %v518_v6 = vpack.c.bf16 %v492_v3, %v490_v2 }
 0x128   : > { %v519_v7 = vpack.c.bf16 %v493_v5, %v491_v4  ;;  %v433_v8 = vpop.f32.mrb[12].mxu0 }
 0x129   : > { %v434_v9 = vadd.f32 %v433_v8, %v2665_v28  ;;  %v435_v10 = vpop.f32.mrb[13].mxu0 }
 0x12a   : > { %v436_v11 = vadd.f32 %v435_v10, %v2668_v29  ;;  %v437_v12 = vpop.f32.mrb[14].mxu0  ;;  %786 = vmatprep.mubr.bf16.mxu1 %v519_v7 }
 0x12b   : > { %v438_v13 = vadd.f32 %v437_v12, %v2665_v28  ;;  %v439_v14 = vpop.f32.mrb[15].mxu0  ;;  %787 = vmatmul.mubr.bf16.gmra.mrb[8].mxu1 %v518_v6  ;;  %v494_v16 = vmax.f32 %v434_v9, 0.0 }
 0x12c   : > { %v440_v15 = vadd.f32 %v439_v14, %v2668_v29  ;;  %v495_v18 = vmax.f32 %v436_v11, 0.0 }
 0x12d   : > { %v496_v17 = vmax.f32 %v438_v13, 0.0 }
 0x12e   : > { %v497_v19 = vmax.f32 %v440_v15, 0.0 }
 0x12f   : > { %v520_v20 = vpack.c.bf16 %v496_v17, %v494_v16 }
 0x130   : > { %v521_v21 = vpack.c.bf16 %v497_v19, %v495_v18  ;;  %v443_v22 = vpop.f32.mrb[16].mxu0  ;;  %v2319_v18 = vld [vmem:[#allocation2 + $0x1e4] ss:$8 sps:$4 sm:$0xff]   ;;  %v2317_v19 = vld [vmem:[#allocation2 + $0x1e0] ss:$8 sps:$4 sm:$0xff]  }
 0x131   : > { %v444_v23 = vadd.f32 %v443_v22, %v2665_v28  ;;  %v445_v24 = vpop.f32.mrb[17].mxu0  ;;  %1129 = vmatprep.subr.bf16.mxu0 %v2319_v18  ;;  %v2325_v22 = vld [vmem:[#allocation2 + $0x204] ss:$8 sps:$4 sm:$0xff]  }
 0x132   : > { %v446_v26 = vadd.f32 %v445_v24, %v2668_v29  ;;  %v447_v30 = vpop.f32.mrb[18].mxu0  ;;  %796 = vmatprep.mubr.bf16.mxu1 %v521_v21  ;;  %1130 = vmatpush1.bf16.msra.mxu0 %v2317_v19  ;;  %v2320_v21 = vld [vmem:[#allocation2 + $0x1f0] ss:$8 sps:$4 sm:$0xff]   ;;  %v2331_v24 = vld [vmem:[#allocation2 + $0x224] ss:$8 sps:$4 sm:$0xff]  }
 0x133   : > { %v448_v31 = vadd.f32 %v447_v30, %v2665_v28  ;;  %v449_v32 = vpop.f32.mrb[19].mxu0  ;;  %797 = vmatmul.mubr.bf16.gmra.mrb[12].mxu1 %v520_v20  ;;  %v498_v34 = vmax.f32 %v444_v23, 0.0  ;;  %v2322_v20 = vld [vmem:[#allocation2 + $0x1f4] ss:$8 sps:$4 sm:$0xff]   ;;  %1468 = vmatprep.subr.bf16.mxu1 %v2325_v22 }
 0x134   : > { %v450_v33 = vadd.f32 %v449_v32, %v2668_v29  ;;  %v499_v36 = vmax.f32 %v446_v26, 0.0  ;;  %1131 = vmatprep.subr.bf16.mxu0 %v2322_v20  ;;  %v2328_v23 = vld [vmem:[#allocation2 + $0x214] ss:$8 sps:$4 sm:$0xff]   ;;  %v2329_v26 = vld [vmem:[#allocation2 + $0x220] ss:$8 sps:$4 sm:$0xff]  }
 0x135   : > { %v500_v35 = vmax.f32 %v448_v31, 0.0  ;;  %v2334_v30 = vld [vmem:[#allocation2 + $0x234] ss:$8 sps:$4 sm:$0xff]   ;;  %v2332_v31 = vld [vmem:[#allocation2 + $0x230] ss:$8 sps:$4 sm:$0xff]  }
 0x136   : > { %v501_v37 = vmax.f32 %v450_v33, 0.0  ;;  %1132 = vmatpush1.bf16.msra.mxu0 %v2320_v21  ;;  %v2337_v32 = vld [vmem:[#allocation2 + $0x244] ss:$8 sps:$4 sm:$0xff]   ;;  %v2335_v33 = vld [vmem:[#allocation2 + $0x240] ss:$8 sps:$4 sm:$0xff]  }
 0x137   : > { %v522_v38 = vpack.c.bf16 %v500_v35, %v498_v34  ;;  %v2340_v34 = vld [vmem:[#allocation2 + $0x254] ss:$8 sps:$4 sm:$0xff]   ;;  %v2338_v35 = vld [vmem:[#allocation2 + $0x250] ss:$8 sps:$4 sm:$0xff]  }
 0x138   : > { %v523_v39 = vpack.c.bf16 %v501_v37, %v499_v36  ;;  %v453_v40 = vpop.f32.mrb[20].mxu0  ;;  %v2343_v36 = vld [vmem:[#allocation2 + $0x264] ss:$8 sps:$4 sm:$0xff]   ;;  %v2341_v37 = vld [vmem:[#allocation2 + $0x260] ss:$8 sps:$4 sm:$0xff]  }
 0x139   : > { %v454_v41 = vadd.f32 %v453_v40, %v2665_v28  ;;  %v455_v42 = vpop.f32.mrb[21].mxu0  ;;  %v2349_v40 = vld [vmem:[#allocation2 + $0x284] ss:$8 sps:$4 sm:$0xff]  }
 0x13a   : > { %v456_v43 = vadd.f32 %v455_v42, %v2668_v29  ;;  %v457_v44 = vpop.f32.mrb[22].mxu0  ;;  %806 = vmatprep.mubr.bf16.mxu1 %v523_v39  ;;  %v2344_v39 = vld [vmem:[#allocation2 + $0x270] ss:$8 sps:$4 sm:$0xff]   ;;  %v2352_v42 = vld [vmem:[#allocation2 + $0x294] ss:$8 sps:$4 sm:$0xff]  }
 0x13b   : > { %v458_v45 = vadd.f32 %v457_v44, %v2665_v28  ;;  %v459_v46 = vpop.f32.mrb[23].mxu0  ;;  %807 = vmatmul.mubr.bf16.gmra.mrb[16].mxu1 %v522_v38  ;;  %v502_v48 = vmax.f32 %v454_v41, 0.0  ;;  %v2346_v38 = vld [vmem:[#allocation2 + $0x274] ss:$8 sps:$4 sm:$0xff]   ;;  %v2347_v41 = vld [vmem:[#allocation2 + $0x280] ss:$8 sps:$4 sm:$0xff]  }
 0x13c   : > { %v460_v47 = vadd.f32 %v459_v46, %v2668_v29  ;;  %v503_v50 = vmax.f32 %v456_v43, 0.0  ;;  %v2350_v43 = vld [vmem:[#allocation2 + $0x290] ss:$8 sps:$4 sm:$0xff]   ;;  %v2355_v44 = vld [vmem:[#allocation2 + $0x2a4] ss:$8 sps:$4 sm:$0xff]  }
 0x13d   : > { %v504_v49 = vmax.f32 %v458_v45, 0.0  ;;  %v2353_v45 = vld [vmem:[#allocation2 + $0x2a0] ss:$8 sps:$4 sm:$0xff]   ;;  %v2358_v46 = vld [vmem:[#allocation2 + $0x2b4] ss:$8 sps:$4 sm:$0xff]  }
 0x13e   : > { %v505_v51 = vmax.f32 %v460_v47, 0.0  ;;  %v2356_v47 = vld [vmem:[#allocation2 + $0x2b0] ss:$8 sps:$4 sm:$0xff]  }
 0x13f   : > { %v524_v52 = vpack.c.bf16 %v504_v49, %v502_v48  ;;  %v2361_v48 = vld [vmem:[#allocation2 + $0x2c4] ss:$8 sps:$4 sm:$0xff]   ;;  %v2359_v49 = vld [vmem:[#allocation2 + $0x2c0] ss:$8 sps:$4 sm:$0xff]  }
 0x140   : > { %v525_v53 = vpack.c.bf16 %v505_v51, %v503_v50  ;;  %v463_v54 = vpop.f32.mrb[24].mxu0  ;;  %v2364_v50 = vld [vmem:[#allocation2 + $0x2d4] ss:$8 sps:$4 sm:$0xff]   ;;  %v2362_v51 = vld [vmem:[#allocation2 + $0x2d0] ss:$8 sps:$4 sm:$0xff]  }
 0x141   : > { %v464_v55 = vadd.f32 %v463_v54, %v2665_v28  ;;  %v465_v56 = vpop.f32.mrb[25].mxu0 }
 0x142   : > { %v466_v57 = vadd.f32 %v465_v56, %v2668_v29  ;;  %v467_v58 = vpop.f32.mrb[26].mxu0  ;;  %816 = vmatprep.mubr.bf16.mxu1 %v525_v53 }
 0x143   : > { %v468_v59 = vadd.f32 %v467_v58, %v2665_v28  ;;  %v469_v60 = vpop.f32.mrb[27].mxu0  ;;  %817 = vmatmul.mubr.bf16.gmra.mrb[20].mxu1 %v524_v52  ;;  %v506_v62 = vmax.f32 %v464_v55, 0.0  ;;  %v562_v52 = vld [vmem:[%s2971_s4] sm:$0x3] }
 0x144   : > { %v470_v61 = vadd.f32 %v469_v60, %v2668_v29  ;;  %v507_v0 = vmax.f32 %v466_v57, 0.0  ;;  %v2706_v53 = vrot.slane %v562_v52, %v2657_v25  ;;  %v2709_v54 = vrot.slane %v562_v52, %v2662_v27 }
 0x145   : > { %v508_v63 = vmax.f32 %v468_v59, 0.0 }
 0x146   : > { %v509_v1 = vmax.f32 %v470_v61, 0.0 }
 0x147   : > { %v526_v2 = vpack.c.bf16 %v508_v63, %v506_v62 }
 0x148   : > { %v527_v3 = vpack.c.bf16 %v509_v1, %v507_v0  ;;  %v473_v4 = vpop.f32.mrb[28].mxu0 }
 0x149   : > { %v474_v5 = vadd.f32 %v473_v4, %v2665_v28  ;;  %v475_v6 = vpop.f32.mrb[29].mxu0 }
 0x14a   : > { %v476_v7 = vadd.f32 %v475_v6, %v2668_v29  ;;  %v477_v8 = vpop.f32.mrb[30].mxu0  ;;  %826 = vmatprep.mubr.bf16.mxu1 %v527_v3 }
 0x14b   : > { %v478_v9 = vadd.f32 %v477_v8, %v2665_v28  ;;  %v479_v10 = vpop.f32.mrb[31].mxu0  ;;  %827 = vmatmul.mubr.bf16.gmra.mrb[24].mxu1 %v526_v2  ;;  %v510_v12 = vmax.f32 %v474_v5, 0.0  ;;  %v2323_v28 = vld [vmem:[#allocation2 + $0x200] ss:$8 sps:$4 sm:$0xff]  }
 0x14c   : > { %v480_v11 = vadd.f32 %v479_v10, %v2668_v29  ;;  %v511_v14 = vmax.f32 %v476_v7, 0.0  ;;  %1469 = vmatpush1.bf16.msra.mxu1 %v2323_v28  ;;  %v2326_v29 = vld [vmem:[#allocation2 + $0x210] ss:$8 sps:$4 sm:$0xff]  }
 0x14d   : > { %v512_v13 = vmax.f32 %v478_v9, 0.0  ;;  %1470 = vmatprep.subr.bf16.mxu1 %v2328_v23 }
 0x14e   : > { %v513_v15 = vmax.f32 %v480_v11, 0.0 }
 0x14f   : > { %v528_v16 = vpack.c.bf16 %v512_v13, %v510_v12 }
 0x150   : > { %v529_v17 = vpack.c.bf16 %v513_v15, %v511_v14  ;;  %1471 = vmatpush1.bf16.msra.mxu1 %v2326_v29 }
 0x151   : > { %1472 = vmatprep.subr.bf16.mxu1 %v2331_v24 }
 0x152   : > { %836 = vmatprep.mubr.bf16.mxu1 %v529_v17 }
 0x153   : > { %837 = vmatmul.mubr.bf16.gmra.mrb[28].mxu1 %v528_v16 }
 0x154   : > { %1473 = vmatpush1.bf16.msra.mxu1 %v2329_v26 }
 0x155   : > { %1474 = vmatprep.subr.bf16.mxu1 %v2334_v30 }
 0x158   : > { %1475 = vmatpush1.bf16.msra.mxu1 %v2332_v31 }
 0x159   : > { %1476 = vmatprep.subr.bf16.mxu1 %v2337_v32 }
 0x15c   : > { %1477 = vmatpush1.bf16.msra.mxu1 %v2335_v33 }
 0x15d   : > { %1478 = vmatprep.subr.bf16.mxu1 %v2340_v34 }
 0x160   : > { %1479 = vmatpush1.bf16.msra.mxu1 %v2338_v35 }
 0x161   : > { %1480 = vmatprep.subr.bf16.mxu1 %v2343_v36 }
 0x164   : > { %1481 = vmatpush1.bf16.msra.mxu1 %v2341_v37 }
 0x165   : > { %1482 = vmatprep.subr.bf16.mxu1 %v2346_v38 }
 0x168   : > { %1483 = vmatpush1.bf16.msra.mxu1 %v2344_v39 }
 0x169   : > { %1484 = vmatprep.subr.bf16.mxu1 %v2349_v40 }
 0x16c   : > { %1485 = vmatpush1.bf16.msra.mxu1 %v2347_v41 }
 0x16d   : > { %1486 = vmatprep.subr.bf16.mxu1 %v2352_v42 }
 0x170   : > { %1487 = vmatpush1.bf16.msra.mxu1 %v2350_v43 }
 0x171   : > { %1488 = vmatprep.subr.bf16.mxu1 %v2355_v44 }
 0x174   : > { %1489 = vmatpush1.bf16.msra.mxu1 %v2353_v45 }
 0x175   : > { %1490 = vmatprep.subr.bf16.mxu1 %v2358_v46 }
 0x178   : > { %1491 = vmatpush1.bf16.msra.mxu1 %v2356_v47 }
 0x179   : > { %1492 = vmatprep.subr.bf16.mxu1 %v2361_v48 }
 0x17c   : > { %1493 = vmatpush1.bf16.msra.mxu1 %v2359_v49 }
 0x17d   : > { %1494 = vmatprep.subr.bf16.mxu1 %v2364_v50 }
 0x180   : > { %1495 = vmatpush1.bf16.msra.mxu1 %v2362_v51 }
 0x1ee   : > { %v768_v55 = vpop.f32.mrb[0].mxu1 }
 0x1ef   : > { %v769_v56 = vadd.f32 %v768_v55, %v2706_v53  ;;  %v770_v57 = vpop.f32.mrb[1].mxu1 }
 0x1f0   : > { %v771_v58 = vadd.f32 %v770_v57, %v2709_v54  ;;  %v772_v59 = vpop.f32.mrb[2].mxu1 }
 0x1f1   : > { %v773_v60 = vadd.f32 %v772_v59, %v2706_v53  ;;  %v774_v61 = vpop.f32.mrb[3].mxu1  ;;  %v847_v63 = vmax.f32 %v769_v56, 0.0 }
 0x1f2   : > { %v775_v62 = vadd.f32 %v774_v61, %v2709_v54  ;;  %v848_v1 = vmax.f32 %v771_v58, 0.0 }
 0x1f3   : > { %v849_v0 = vmax.f32 %v773_v60, 0.0 }
 0x1f4   : > { %v850_v2 = vmax.f32 %v775_v62, 0.0 }
 0x1f5   : > { %v879_v3 = vpack.c.bf16 %v849_v0, %v847_v63 }
 0x1f6   : > { %v880_v4 = vpack.c.bf16 %v850_v2, %v848_v1  ;;  %v778_v5 = vpop.f32.mrb[4].mxu1 }
 0x1f7   : > { %v779_v6 = vadd.f32 %v778_v5, %v2706_v53  ;;  %v780_v7 = vpop.f32.mrb[5].mxu1 }
 0x1f8   : > { %v781_v8 = vadd.f32 %v780_v7, %v2709_v54  ;;  %v782_v9 = vpop.f32.mrb[6].mxu1  ;;  %1133 = vmatprep.mubr.bf16.mxu0 %v880_v4 }
 0x1f9   : > { %v783_v10 = vadd.f32 %v782_v9, %v2706_v53  ;;  %v784_v11 = vpop.f32.mrb[7].mxu1  ;;  %1134 = vmatmul.mubr.bf16.vlgmr.msra.gmra.mrb[32].mxu0 %v879_v3  ;;  %v851_v13 = vmax.f32 %v779_v6, 0.0 }
 0x1fa   : > { %v785_v12 = vadd.f32 %v784_v11, %v2709_v54  ;;  %v852_v15 = vmax.f32 %v781_v8, 0.0 }
 0x1fb   : > { %v853_v14 = vmax.f32 %v783_v10, 0.0 }
 0x1fc   : > { %v854_v16 = vmax.f32 %v785_v12, 0.0 }
 0x1fd   : > { %v881_v17 = vpack.c.bf16 %v853_v14, %v851_v13 }
 0x1fe   : > { %v882_v18 = vpack.c.bf16 %v854_v16, %v852_v15  ;;  %v788_v19 = vpop.f32.mrb[8].mxu1 }
 0x1ff   : > { %v789_v20 = vadd.f32 %v788_v19, %v2706_v53  ;;  %v790_v21 = vpop.f32.mrb[9].mxu1 }
 0x200   : > { %v791_v28 = vadd.f32 %v790_v21, %v2709_v54  ;;  %v792_v22 = vpop.f32.mrb[10].mxu1  ;;  %1143 = vmatprep.mubr.bf16.mxu0 %v882_v18 }
 0x201   : > { %v793_v23 = vadd.f32 %v792_v22, %v2706_v53  ;;  %v794_v29 = vpop.f32.mrb[11].mxu1  ;;  %1144 = vmatmul.mubr.bf16.gmra.mrb[36].mxu0 %v881_v17  ;;  %v855_v26 = vmax.f32 %v789_v20, 0.0 }
 0x202   : > { %v795_v24 = vadd.f32 %v794_v29, %v2709_v54  ;;  %v856_v31 = vmax.f32 %v791_v28, 0.0 }
 0x203   : > { %v857_v30 = vmax.f32 %v793_v23, 0.0 }
 0x204   : > { %v858_v32 = vmax.f32 %v795_v24, 0.0 }
 0x205   : > { %v883_v33 = vpack.c.bf16 %v857_v30, %v855_v26 }
 0x206   : > { %v884_v34 = vpack.c.bf16 %v858_v32, %v856_v31  ;;  %v798_v35 = vpop.f32.mrb[12].mxu1 }
 0x207   : > { %v799_v36 = vadd.f32 %v798_v35, %v2706_v53  ;;  %v800_v37 = vpop.f32.mrb[13].mxu1 }
 0x208   : > { %v801_v38 = vadd.f32 %v800_v37, %v2709_v54  ;;  %v802_v39 = vpop.f32.mrb[14].mxu1  ;;  %1153 = vmatprep.mubr.bf16.mxu0 %v884_v34 }
 0x209   : > { %v803_v40 = vadd.f32 %v802_v39, %v2706_v53  ;;  %v804_v41 = vpop.f32.mrb[15].mxu1  ;;  %1154 = vmatmul.mubr.bf16.gmra.mrb[40].mxu0 %v883_v33  ;;  %v859_v43 = vmax.f32 %v799_v36, 0.0 }
 0x20a   : > { %v805_v42 = vadd.f32 %v804_v41, %v2709_v54  ;;  %v860_v45 = vmax.f32 %v801_v38, 0.0 }
 0x20b   : > { %v861_v44 = vmax.f32 %v803_v40, 0.0 }
 0x20c   : > { %v862_v46 = vmax.f32 %v805_v42, 0.0 }
 0x20d   : > { %v885_v47 = vpack.c.bf16 %v861_v44, %v859_v43 }
 0x20e   : > { %v886_v48 = vpack.c.bf16 %v862_v46, %v860_v45  ;;  %v808_v49 = vpop.f32.mrb[16].mxu1  ;;  %v2367_v45 = vld [vmem:[#allocation2 + $0x2e4] ss:$8 sps:$4 sm:$0xff]   ;;  %v2365_v46 = vld [vmem:[#allocation2 + $0x2e0] ss:$8 sps:$4 sm:$0xff]  }
 0x20f   : > { %v809_v50 = vadd.f32 %v808_v49, %v2706_v53  ;;  %v810_v51 = vpop.f32.mrb[17].mxu1  ;;  %1496 = vmatprep.subr.bf16.mxu1 %v2367_v45  ;;  %v2373_v49 = vld [vmem:[%s2972_s5 + $0x48] sm:$0xff]  }
 0x210   : > { %v811_v52 = vadd.f32 %v810_v51, %v2709_v54  ;;  %v812_v55 = vpop.f32.mrb[18].mxu1  ;;  %1163 = vmatprep.mubr.bf16.mxu0 %v886_v48  ;;  %1497 = vmatpush1.bf16.msra.mxu1 %v2365_v46  ;;  %v2368_v48 = vld [vmem:[#allocation2 + $0x2f0] ss:$8 sps:$4 sm:$0xff]  }
 0x211   : > { %v813_v56 = vadd.f32 %v812_v55, %v2706_v53  ;;  %v814_v57 = vpop.f32.mrb[19].mxu1  ;;  %1164 = vmatmul.mubr.bf16.gmra.mrb[44].mxu0 %v885_v47  ;;  %v863_v59 = vmax.f32 %v809_v50, 0.0  ;;  %v2370_v47 = vld [vmem:[#allocation2 + $0x2f4] ss:$8 sps:$4 sm:$0xff]   ;;  %v2374_v50 = vld [vmem:[%s2972_s5 + $0x8] sm:$0xff]  }
 0x212   : > { %v815_v58 = vadd.f32 %v814_v57, %v2709_v54  ;;  %v864_v61 = vmax.f32 %v811_v52, 0.0  ;;  %1498 = vmatprep.subr.bf16.mxu1 %v2370_v47  ;;  %v2375_v51 = vld [vmem:[%s2972_s5 + $0x50] sm:$0xff]   ;;  %v2377_v55 = vld [vmem:[%s2972_s5 + $0x58] sm:$0xff]   ;;  %v2379_v57 = vld [vmem:[%s2972_s5 + $0x60] sm:$0xff]  }
 0x213   : > { %v865_v60 = vmax.f32 %v813_v56, 0.0  ;;  %v2376_v52 = vld [vmem:[%s2972_s5 + $0x10] sm:$0xff]   ;;  %v2378_v56 = vld [vmem:[%s2972_s5 + $0x18] sm:$0xff]  }
 0x214   : > { %v866_v62 = vmax.f32 %v815_v58, 0.0  ;;  %1499 = vmatpush1.bf16.msra.mxu1 %v2368_v48  ;;  %v2380_v58 = vld [vmem:[%s2972_s5 + $0x20] sm:$0xff]  }
 0x215   : > { %v887_v63 = vpack.c.bf16 %v865_v60, %v863_v59  ;;  %v2381_v59 = vld [vmem:[%s2972_s5 + $0x68] sm:$0xff]  }
 0x216   : > { %v888_v0 = vpack.c.bf16 %v866_v62, %v864_v61  ;;  %v818_v1 = vpop.f32.mrb[20].mxu1  ;;  %v2382_v60 = vld [vmem:[%s2972_s5 + $0x28] sm:$0xff]   ;;  %v2383_v61 = vld [vmem:[%s2972_s5 + $0x70] sm:$0xff]  }
 0x217   : > { %v819_v2 = vadd.f32 %v818_v1, %v2706_v53  ;;  %v820_v3 = vpop.f32.mrb[21].mxu1  ;;  %v2384_v62 = vld [vmem:[%s2972_s5 + $0x30] sm:$0xff]  }
 0x218   : > { %v821_v4 = vadd.f32 %v820_v3, %v2709_v54  ;;  %v822_v5 = vpop.f32.mrb[22].mxu1  ;;  %1173 = vmatprep.mubr.bf16.mxu0 %v888_v0 }
 0x219   : > { %v823_v6 = vadd.f32 %v822_v5, %v2706_v53  ;;  %v824_v7 = vpop.f32.mrb[23].mxu1  ;;  %1174 = vmatmul.mubr.bf16.gmra.mrb[48].mxu0 %v887_v63  ;;  %v867_v9 = vmax.f32 %v819_v2, 0.0  ;;  %v2016_v63 = vld [vmem:[%s2971_s4 + $0x2] sm:$0x3] }
 0x21a   : > { %v825_v8 = vadd.f32 %v824_v7, %v2709_v54  ;;  %v868_v11 = vmax.f32 %v821_v4, 0.0  ;;  %v2789_v0 = vrot.slane %v2016_v63, %v2657_v25  ;;  %v2792_v1 = vrot.slane %v2016_v63, %v2662_v27 }
 0x21b   : > { %v869_v10 = vmax.f32 %v823_v6, 0.0 }
 0x21c   : > { %v870_v12 = vmax.f32 %v825_v8, 0.0 }
 0x21d   : > { %v889_v13 = vpack.c.bf16 %v869_v10, %v867_v9 }
 0x21e   : > { %v890_v14 = vpack.c.bf16 %v870_v12, %v868_v11  ;;  %v828_v15 = vpop.f32.mrb[24].mxu1 }
 0x21f   : > { %v829_v16 = vadd.f32 %v828_v15, %v2706_v53  ;;  %v830_v17 = vpop.f32.mrb[25].mxu1 }
 0x220   : > { %v831_v18 = vadd.f32 %v830_v17, %v2709_v54  ;;  %v832_v19 = vpop.f32.mrb[26].mxu1  ;;  %1183 = vmatprep.mubr.bf16.mxu0 %v890_v14 }
 0x221   : > { %v833_v20 = vadd.f32 %v832_v19, %v2706_v53  ;;  %v834_v21 = vpop.f32.mrb[27].mxu1  ;;  %1184 = vmatmul.mubr.bf16.gmra.mrb[52].mxu0 %v889_v13  ;;  %v871_v22 = vmax.f32 %v829_v16, 0.0 }
 0x222   : > { %v835_v28 = vadd.f32 %v834_v21, %v2709_v54  ;;  %v872_v29 = vmax.f32 %v831_v18, 0.0 }
 0x223   : > { %v873_v23 = vmax.f32 %v833_v20, 0.0 }
 0x224   : > { %v874_v24 = vmax.f32 %v835_v28, 0.0 }
 0x225   : > { %v891_v26 = vpack.c.bf16 %v873_v23, %v871_v22 }
 0x226   : > { %v892_v30 = vpack.c.bf16 %v874_v24, %v872_v29  ;;  %v838_v31 = vpop.f32.mrb[28].mxu1 }
 0x227   : > { %v839_v32 = vadd.f32 %v838_v31, %v2706_v53  ;;  %v840_v33 = vpop.f32.mrb[29].mxu1 }
 0x228   : > { %v841_v34 = vadd.f32 %v840_v33, %v2709_v54  ;;  %v842_v35 = vpop.f32.mrb[30].mxu1  ;;  %1193 = vmatprep.mubr.bf16.mxu0 %v892_v30 }
 0x229   : > { %v843_v36 = vadd.f32 %v842_v35, %v2706_v53  ;;  %v844_v37 = vpop.f32.mrb[31].mxu1  ;;  %1194 = vmatmul.mubr.bf16.gmra.mrb[56].mxu0 %v891_v26  ;;  %v875_v39 = vmax.f32 %v839_v32, 0.0  ;;  %v2371_v53 = vld [vmem:[%s2972_s5 + $0x40] sm:$0xff]  }
 0x22a   : > { %v845_v38 = vadd.f32 %v844_v37, %v2709_v54  ;;  %v876_v41 = vmax.f32 %v841_v34, 0.0  ;;  %v2372_v54 = vld [vmem:[%s2972_s5] sm:$0xff]   ;;  %2105 = vmatprep.subr.bf16.mxu0 %v2371_v53 }
 0x22b   : > { %v877_v40 = vmax.f32 %v843_v36, 0.0  ;;  %2106 = vmatpush3.bf16.msra.mxu0 %v2372_v54 }
 0x22c   : > { %v878_v42 = vmax.f32 %v845_v38, 0.0  ;;  %2107 = vmatprep.subr.bf16.mxu0 %v2373_v49 }
 0x22d   : > { %v893_v43 = vpack.c.bf16 %v877_v40, %v875_v39 }
 0x22e   : > { %v894_v44 = vpack.c.bf16 %v878_v42, %v876_v41 }
 0x22f   : > { %2108 = vmatpush3.bf16.msra.mxu0 %v2374_v50 }
 0x230   : > { %1203 = vmatprep.mubr.bf16.mxu0 %v894_v44  ;;  %2109 = vmatprep.subr.bf16.mxu0 %v2375_v51 }
 0x231   : > { %1204 = vmatmul.mubr.bf16.gmra.mrb[60].mxu0 %v893_v43 }
 0x233   : > { %2110 = vmatpush3.bf16.msra.mxu0 %v2376_v52 }
 0x234   : > { %2111 = vmatprep.subr.bf16.mxu0 %v2377_v55 }
 0x237   : > { %2112 = vmatpush3.bf16.msra.mxu0 %v2378_v56 }
 0x238   : > { %2113 = vmatprep.subr.bf16.mxu0 %v2379_v57 }
 0x23b   : > { %2114 = vmatpush3.bf16.msra.mxu0 %v2380_v58 }
 0x23c   : > { %2115 = vmatprep.subr.bf16.mxu0 %v2381_v59 }
 0x23f   : > { %2116 = vmatpush3.bf16.msra.mxu0 %v2382_v60 }
 0x240   : > { %2117 = vmatprep.subr.bf16.mxu0 %v2383_v61 }
 0x243   : > { %2118 = vmatpush3.bf16.msra.mxu0 %v2384_v62 }
 0x2cc   : > { %v1135_v2 = vpop.f32.mrb[32].mxu0 }
 0x2cd   : > { %v1136_v3 = vadd.f32 %v1135_v2, %v2789_v0  ;;  %v1137_v4 = vpop.f32.mrb[33].mxu0 }
 0x2ce   : > { %v1138_v5 = vadd.f32 %v1137_v4, %v2792_v1  ;;  %v1139_v6 = vpop.f32.mrb[34].mxu0 }
 0x2cf   : > { %v1140_v7 = vadd.f32 %v1139_v6, %v2789_v0  ;;  %v1141_v8 = vpop.f32.mrb[35].mxu0  ;;  %v1214_v10 = vmax.f32 %v1136_v3, 0.0 }
 0x2d0   : > { %v1142_v9 = vadd.f32 %v1141_v8, %v2792_v1  ;;  %v1215_v12 = vmax.f32 %v1138_v5, 0.0 }
 0x2d1   : > { %v1216_v11 = vmax.f32 %v1140_v7, 0.0 }
 0x2d2   : > { %v1217_v13 = vmax.f32 %v1142_v9, 0.0 }
 0x2d3   : > { %v1246_v14 = vpack.c.bf16 %v1216_v11, %v1214_v10 }
 0x2d4   : > { %v1247_v15 = vpack.c.bf16 %v1217_v13, %v1215_v12  ;;  %v1145_v16 = vpop.f32.mrb[36].mxu0 }
 0x2d5   : > { %v1146_v17 = vadd.f32 %v1145_v16, %v2789_v0  ;;  %v1147_v18 = vpop.f32.mrb[37].mxu0 }
 0x2d6   : > { %v1148_v19 = vadd.f32 %v1147_v18, %v2792_v1  ;;  %v1149_v20 = vpop.f32.mrb[38].mxu0  ;;  %1500 = vmatprep.mubr.bf16.mxu1 %v1247_v15 }
 0x2d7   : > { %v1150_v21 = vadd.f32 %v1149_v20, %v2789_v0  ;;  %v1151_v28 = vpop.f32.mrb[39].mxu0  ;;  %1501 = vmatmul.mubr.bf16.vlgmr.msra.gmra.mrb[32].mxu1 %v1246_v14  ;;  %v1218_v23 = vmax.f32 %v1146_v17, 0.0 }
 0x2d8   : > { %v1152_v22 = vadd.f32 %v1151_v28, %v2792_v1  ;;  %v1219_v24 = vmax.f32 %v1148_v19, 0.0 }
 0x2d9   : > { %v1220_v29 = vmax.f32 %v1150_v21, 0.0 }
 0x2da   : > { %v1221_v26 = vmax.f32 %v1152_v22, 0.0 }
 0x2db   : > { %v1248_v30 = vpack.c.bf16 %v1220_v29, %v1218_v23 }
 0x2dc   : > { %v1249_v31 = vpack.c.bf16 %v1221_v26, %v1219_v24  ;;  %v1155_v32 = vpop.f32.mrb[40].mxu0 }
 0x2dd   : > { %v1156_v33 = vadd.f32 %v1155_v32, %v2789_v0  ;;  %v1157_v34 = vpop.f32.mrb[41].mxu0 }
 0x2de   : > { %v1158_v35 = vadd.f32 %v1157_v34, %v2792_v1  ;;  %v1159_v36 = vpop.f32.mrb[42].mxu0  ;;  %1510 = vmatprep.mubr.bf16.mxu1 %v1249_v31 }
 0x2df   : > { %v1160_v37 = vadd.f32 %v1159_v36, %v2789_v0  ;;  %v1161_v38 = vpop.f32.mrb[43].mxu0  ;;  %1511 = vmatmul.mubr.bf16.gmra.mrb[36].mxu1 %v1248_v30  ;;  %v1222_v40 = vmax.f32 %v1156_v33, 0.0 }
 0x2e0   : > { %v1162_v39 = vadd.f32 %v1161_v38, %v2792_v1  ;;  %v1223_v42 = vmax.f32 %v1158_v35, 0.0 }
 0x2e1   : > { %v1224_v41 = vmax.f32 %v1160_v37, 0.0 }
 0x2e2   : > { %v1225_v43 = vmax.f32 %v1162_v39, 0.0 }
 0x2e3   : > { %v1250_v44 = vpack.c.bf16 %v1224_v41, %v1222_v40 }
 0x2e4   : > { %v1251_v45 = vpack.c.bf16 %v1225_v43, %v1223_v42  ;;  %v1165_v46 = vpop.f32.mrb[44].mxu0 }
 0x2e5   : > { %v1166_v47 = vadd.f32 %v1165_v46, %v2789_v0  ;;  %v1167_v48 = vpop.f32.mrb[45].mxu0 }
 0x2e6   : > { %v1168_v53 = vadd.f32 %v1167_v48, %v2792_v1  ;;  %v1169_v54 = vpop.f32.mrb[46].mxu0  ;;  %1520 = vmatprep.mubr.bf16.mxu1 %v1251_v45 }
 0x2e7   : > { %v1170_v49 = vadd.f32 %v1169_v54, %v2789_v0  ;;  %v1171_v50 = vpop.f32.mrb[47].mxu0  ;;  %1521 = vmatmul.mubr.bf16.gmra.mrb[40].mxu1 %v1250_v44  ;;  %v1226_v52 = vmax.f32 %v1166_v47, 0.0 }
 0x2e8   : > { %v1172_v51 = vadd.f32 %v1171_v50, %v2792_v1  ;;  %v1227_v56 = vmax.f32 %v1168_v53, 0.0 }
 0x2e9   : > { %v1228_v55 = vmax.f32 %v1170_v49, 0.0 }
 0x2ea   : > { %v1229_v57 = vmax.f32 %v1172_v51, 0.0 }
 0x2eb   : > { %v1252_v58 = vpack.c.bf16 %v1228_v55, %v1226_v52 }
 0x2ec   : > { %v1253_v59 = vpack.c.bf16 %v1229_v57, %v1227_v56  ;;  %v1175_v60 = vpop.f32.mrb[48].mxu0  ;;  %v2385_v56 = vld [vmem:[%s2972_s5 + $0x78] sm:$0xff]  }
 0x2ed   : > { %v1176_v61 = vadd.f32 %v1175_v60, %v2789_v0  ;;  %v1177_v62 = vpop.f32.mrb[49].mxu0  ;;  %2119 = vmatprep.subr.bf16.mxu0 %v2385_v56 }
 0x2ee   : > { %v1178_v63 = vadd.f32 %v1177_v62, %v2792_v1  ;;  %v1179_v2 = vpop.f32.mrb[50].mxu0  ;;  %1530 = vmatprep.mubr.bf16.mxu1 %v1253_v59 }
 0x2ef   : > { %v1180_v3 = vadd.f32 %v1179_v2, %v2789_v0  ;;  %v1181_v4 = vpop.f32.mrb[51].mxu0  ;;  %1531 = vmatmul.mubr.bf16.gmra.mrb[44].mxu1 %v1252_v58  ;;  %v1230_v6 = vmax.f32 %v1176_v61, 0.0 }
 0x2f0   : > { %v1182_v5 = vadd.f32 %v1181_v4, %v2792_v1  ;;  %v1231_v8 = vmax.f32 %v1178_v63, 0.0 }
 0x2f1   : > { %v1232_v7 = vmax.f32 %v1180_v3, 0.0 }
 0x2f2   : > { %v1233_v9 = vmax.f32 %v1182_v5, 0.0 }
 0x2f3   : > { %v1254_v10 = vpack.c.bf16 %v1232_v7, %v1230_v6 }
 0x2f4   : > { %v1255_v11 = vpack.c.bf16 %v1233_v9, %v1231_v8  ;;  %v1185_v12 = vpop.f32.mrb[52].mxu0 }
 0x2f5   : > { %v1186_v13 = vadd.f32 %v1185_v12, %v2789_v0  ;;  %v1187_v14 = vpop.f32.mrb[53].mxu0 }
 0x2f6   : > { %v1188_v15 = vadd.f32 %v1187_v14, %v2792_v1  ;;  %v1189_v16 = vpop.f32.mrb[54].mxu0  ;;  %1540 = vmatprep.mubr.bf16.mxu1 %v1255_v11 }
 0x2f7   : > { %v1190_v17 = vadd.f32 %v1189_v16, %v2789_v0  ;;  %v1191_v18 = vpop.f32.mrb[55].mxu0  ;;  %1541 = vmatmul.mubr.bf16.gmra.mrb[48].mxu1 %v1254_v10  ;;  %v1234_v20 = vmax.f32 %v1186_v13, 0.0 }
 0x2f8   : > { %v1192_v19 = vadd.f32 %v1191_v18, %v2792_v1  ;;  %v1235_v28 = vmax.f32 %v1188_v15, 0.0 }
 0x2f9   : > { %v1236_v21 = vmax.f32 %v1190_v17, 0.0 }
 0x2fa   : > { %v1237_v22 = vmax.f32 %v1192_v19, 0.0 }
 0x2fb   : > { %v1256_v23 = vpack.c.bf16 %v1236_v21, %v1234_v20 }
 0x2fc   : > { %v1257_v29 = vpack.c.bf16 %v1237_v22, %v1235_v28  ;;  %v1195_v24 = vpop.f32.mrb[56].mxu0 }
 0x2fd   : > { %v1196_v26 = vadd.f32 %v1195_v24, %v2789_v0  ;;  %v1197_v30 = vpop.f32.mrb[57].mxu0 }
 0x2fe   : > { %v1198_v31 = vadd.f32 %v1197_v30, %v2792_v1  ;;  %v1199_v32 = vpop.f32.mrb[58].mxu0  ;;  %1550 = vmatprep.mubr.bf16.mxu1 %v1257_v29 }
 0x2ff   : > { %v1200_v33 = vadd.f32 %v1199_v32, %v2789_v0  ;;  %v1201_v34 = vpop.f32.mrb[59].mxu0  ;;  %1551 = vmatmul.mubr.bf16.gmra.mrb[52].mxu1 %v1256_v23  ;;  %v1238_v36 = vmax.f32 %v1196_v26, 0.0 }
 0x300   : > { %v1202_v35 = vadd.f32 %v1201_v34, %v2792_v1  ;;  %v1239_v38 = vmax.f32 %v1198_v31, 0.0 }
 0x301   : > { %v1240_v37 = vmax.f32 %v1200_v33, 0.0 }
 0x302   : > { %v1241_v39 = vmax.f32 %v1202_v35, 0.0 }
 0x303   : > { %v1258_v40 = vpack.c.bf16 %v1240_v37, %v1238_v36 }
 0x304   : > { %v1259_v41 = vpack.c.bf16 %v1241_v39, %v1239_v38  ;;  %v1205_v42 = vpop.f32.mrb[60].mxu0 }
 0x305   : > { %v1206_v43 = vadd.f32 %v1205_v42, %v2789_v0  ;;  %v1207_v44 = vpop.f32.mrb[61].mxu0 }
 0x306   : > { %v1208_v45 = vadd.f32 %v1207_v44, %v2792_v1  ;;  %v1209_v46 = vpop.f32.mrb[62].mxu0  ;;  %1560 = vmatprep.mubr.bf16.mxu1 %v1259_v41 }
 0x307   : > { %v1210_v47 = vadd.f32 %v1209_v46, %v2789_v0  ;;  %v1211_v48 = vpop.f32.mrb[63].mxu0  ;;  %1561 = vmatmul.mubr.bf16.gmra.mrb[56].mxu1 %v1258_v40  ;;  %v1242_v54 = vmax.f32 %v1206_v43, 0.0  ;;  %v2386_v0 = vld [vmem:[%s2972_s5 + $0x38] sm:$0xff]  }
 0x308   : > { %v1212_v53 = vadd.f32 %v1211_v48, %v2792_v1  ;;  %v1243_v50 = vmax.f32 %v1208_v45, 0.0  ;;  %2120 = vmatpush3.bf16.msra.mxu0 %v2386_v0  ;;  %v2049_v1 = vld [vmem:[%s2971_s4 + $0x4] sm:$0x3] }
 0x309   : > { %v1244_v49 = vmax.f32 %v1210_v47, 0.0  ;;  %v2836_v57 = vrot.slane %v2049_v1, %v2657_v25  ;;  %v2839_v58 = vrot.slane %v2049_v1, %v2662_v27 }
 0x30a   : > { %v1245_v51 = vmax.f32 %v1212_v53, 0.0 }
 0x30b   : > { %v1260_v52 = vpack.c.bf16 %v1244_v49, %v1242_v54 }
 0x30c   : > { %v1261_v55 = vpack.c.bf16 %v1245_v51, %v1243_v50 }
 0x30e   : > { %1570 = vmatprep.mubr.bf16.mxu1 %v1261_v55 }
 0x30f   : > { %1571 = vmatmul.mubr.bf16.gmra.mrb[60].mxu1 %v1260_v52 }
 0x3aa   : > { %v1502_v59 = vpop.f32.mrb[32].mxu1 }
 0x3ab   : > { %v1503_v60 = vadd.f32 %v1502_v59, %v2836_v57  ;;  %v1504_v61 = vpop.f32.mrb[33].mxu1 }
 0x3ac   : > { %v1505_v62 = vadd.f32 %v1504_v61, %v2839_v58  ;;  %v1506_v63 = vpop.f32.mrb[34].mxu1 }
 0x3ad   : > { %v1507_v2 = vadd.f32 %v1506_v63, %v2836_v57  ;;  %v1508_v3 = vpop.f32.mrb[35].mxu1  ;;  %v1581_v5 = vmax.f32 %v1503_v60, 0.0 }
 0x3ae   : > { %v1509_v4 = vadd.f32 %v1508_v3, %v2839_v58  ;;  %v1582_v7 = vmax.f32 %v1505_v62, 0.0 }
 0x3af   : > { %v1583_v6 = vmax.f32 %v1507_v2, 0.0 }
 0x3b0   : > { %v1584_v25 = vmax.f32 %v1509_v4, 0.0 }
 0x3b1   : > { %v1613_v8 = vpack.c.bf16 %v1583_v6, %v1581_v5 }
 0x3b2   : > { %v1614_v9 = vpack.c.bf16 %v1584_v25, %v1582_v7  ;;  %v1512_v27 = vpop.f32.mrb[36].mxu1 }
 0x3b3   : > { %v1513_v10 = vadd.f32 %v1512_v27, %v2836_v57  ;;  %v1514_v11 = vpop.f32.mrb[37].mxu1 }
 0x3b4   : > { %v1515_v12 = vadd.f32 %v1514_v11, %v2839_v58  ;;  %v1516_v13 = vpop.f32.mrb[38].mxu1  ;;  %1796 = vmatprep.mubr.bf16.mxu0 %v1614_v9 }
 0x3b5   : > { %v1517_v14 = vadd.f32 %v1516_v13, %v2836_v57  ;;  %v1518_v15 = vpop.f32.mrb[39].mxu1  ;;  %1797 = vmatmul.mubr.bf16.vlgmr.msra.gmra.mrb[64].mxu0 %v1613_v8  ;;  %v1585_v17 = vmax.f32 %v1513_v10, 0.0 }
 0x3b6   : > { %v1519_v16 = vadd.f32 %v1518_v15, %v2839_v58  ;;  %v1586_v19 = vmax.f32 %v1515_v12, 0.0 }
 0x3b7   : > { %v1587_v18 = vmax.f32 %v1517_v14, 0.0 }
 0x3b8   : > { %v1588_v20 = vmax.f32 %v1519_v16, 0.0 }
 0x3b9   : > { %v1615_v21 = vpack.c.bf16 %v1587_v18, %v1585_v17 }
 0x3ba   : > { %v1616_v28 = vpack.c.bf16 %v1588_v20, %v1586_v19  ;;  %v1522_v22 = vpop.f32.mrb[40].mxu1 }
 0x3bb   : > { %v1523_v23 = vadd.f32 %v1522_v22, %v2836_v57  ;;  %v1524_v29 = vpop.f32.mrb[41].mxu1 }
 0x3bc   : > { %v1525_v24 = vadd.f32 %v1524_v29, %v2839_v58  ;;  %v1526_v26 = vpop.f32.mrb[42].mxu1  ;;  %1804 = vmatprep.mubr.bf16.mxu0 %v1616_v28 }
 0x3bd   : > { %v1527_v30 = vadd.f32 %v1526_v26, %v2836_v57  ;;  %v1528_v31 = vpop.f32.mrb[43].mxu1  ;;  %1805 = vmatmul.mubr.bf16.gmra.mrb[68].mxu0 %v1615_v21  ;;  %v1589_v33 = vmax.f32 %v1523_v23, 0.0 }
 0x3be   : > { %v1529_v32 = vadd.f32 %v1528_v31, %v2839_v58  ;;  %v1590_v35 = vmax.f32 %v1525_v24, 0.0 }
 0x3bf   : > { %v1591_v34 = vmax.f32 %v1527_v30, 0.0 }
 0x3c0   : > { %v1592_v36 = vmax.f32 %v1529_v32, 0.0 }
 0x3c1   : > { %v1617_v37 = vpack.c.bf16 %v1591_v34, %v1589_v33 }
 0x3c2   : > { %v1618_v38 = vpack.c.bf16 %v1592_v36, %v1590_v35  ;;  %v1532_v39 = vpop.f32.mrb[44].mxu1 }
 0x3c3   : > { %v1533_v40 = vadd.f32 %v1532_v39, %v2836_v57  ;;  %v1534_v41 = vpop.f32.mrb[45].mxu1 }
 0x3c4   : > { %v1535_v42 = vadd.f32 %v1534_v41, %v2839_v58  ;;  %v1536_v43 = vpop.f32.mrb[46].mxu1  ;;  %1812 = vmatprep.mubr.bf16.mxu0 %v1618_v38 }
 0x3c5   : > { %v1537_v44 = vadd.f32 %v1536_v43, %v2836_v57  ;;  %v1538_v45 = vpop.f32.mrb[47].mxu1  ;;  %1813 = vmatmul.mubr.bf16.gmra.mrb[72].mxu0 %v1617_v37  ;;  %v1593_v47 = vmax.f32 %v1533_v40, 0.0 }
 0x3c6   : > { %v1539_v46 = vadd.f32 %v1538_v45, %v2839_v58  ;;  %v1594_v53 = vmax.f32 %v1535_v42, 0.0 }
 0x3c7   : > { %v1595_v48 = vmax.f32 %v1537_v44, 0.0 }
 0x3c8   : > { %v1596_v54 = vmax.f32 %v1539_v46, 0.0 }
 0x3c9   : > { %v1619_v49 = vpack.c.bf16 %v1595_v48, %v1593_v47 }
 0x3ca   : > { %v1620_v50 = vpack.c.bf16 %v1596_v54, %v1594_v53  ;;  %v1542_v51 = vpop.f32.mrb[48].mxu1 }
 0x3cb   : > { %v1543_v52 = vadd.f32 %v1542_v51, %v2836_v57  ;;  %v1544_v55 = vpop.f32.mrb[49].mxu1 }
 0x3cc   : > { %v1545_v56 = vadd.f32 %v1544_v55, %v2839_v58  ;;  %v1546_v0 = vpop.f32.mrb[50].mxu1  ;;  %1820 = vmatprep.mubr.bf16.mxu0 %v1620_v50 }
 0x3cd   : > { %v1547_v1 = vadd.f32 %v1546_v0, %v2836_v57  ;;  %v1548_v59 = vpop.f32.mrb[51].mxu1  ;;  %1821 = vmatmul.mubr.bf16.gmra.mrb[76].mxu0 %v1619_v49  ;;  %v1597_v61 = vmax.f32 %v1543_v52, 0.0 }
 0x3ce   : > { %v1549_v60 = vadd.f32 %v1548_v59, %v2839_v58  ;;  %v1598_v63 = vmax.f32 %v1545_v56, 0.0 }
 0x3cf   : > { %v1599_v62 = vmax.f32 %v1547_v1, 0.0 }
 0x3d0   : > { %v1600_v2 = vmax.f32 %v1549_v60, 0.0 }
 0x3d1   : > { %v1621_v3 = vpack.c.bf16 %v1599_v62, %v1597_v61 }
 0x3d2   : > { %v1622_v4 = vpack.c.bf16 %v1600_v2, %v1598_v63  ;;  %v1552_v5 = vpop.f32.mrb[52].mxu1 }
 0x3d3   : > { %v1553_v6 = vadd.f32 %v1552_v5, %v2836_v57  ;;  %v1554_v7 = vpop.f32.mrb[53].mxu1 }
 0x3d4   : > { %v1555_v25 = vadd.f32 %v1554_v7, %v2839_v58  ;;  %v1556_v8 = vpop.f32.mrb[54].mxu1  ;;  %1828 = vmatprep.mubr.bf16.mxu0 %v1622_v4 }
 0x3d5   : > { %v1557_v9 = vadd.f32 %v1556_v8, %v2836_v57  ;;  %v1558_v27 = vpop.f32.mrb[55].mxu1  ;;  %1829 = vmatmul.mubr.bf16.gmra.mrb[80].mxu0 %v1621_v3  ;;  %v1601_v11 = vmax.f32 %v1553_v6, 0.0 }
 0x3d6   : > { %v1559_v10 = vadd.f32 %v1558_v27, %v2839_v58  ;;  %v1602_v13 = vmax.f32 %v1555_v25, 0.0 }
 0x3d7   : > { %v1603_v12 = vmax.f32 %v1557_v9, 0.0 }
 0x3d8   : > { %v1604_v14 = vmax.f32 %v1559_v10, 0.0 }
 0x3d9   : > { %v1623_v15 = vpack.c.bf16 %v1603_v12, %v1601_v11 }
 0x3da   : > { %v1624_v16 = vpack.c.bf16 %v1604_v14, %v1602_v13  ;;  %v1562_v17 = vpop.f32.mrb[56].mxu1 }
 0x3db   : > { %v1563_v18 = vadd.f32 %v1562_v17, %v2836_v57  ;;  %v1564_v19 = vpop.f32.mrb[57].mxu1 }
 0x3dc   : > { %v1565_v20 = vadd.f32 %v1564_v19, %v2839_v58  ;;  %v1566_v21 = vpop.f32.mrb[58].mxu1  ;;  %1836 = vmatprep.mubr.bf16.mxu0 %v1624_v16 }
 0x3dd   : > { %v1567_v28 = vadd.f32 %v1566_v21, %v2836_v57  ;;  %v1568_v22 = vpop.f32.mrb[59].mxu1  ;;  %1837 = vmatmul.mubr.bf16.gmra.mrb[84].mxu0 %v1623_v15  ;;  %v1605_v29 = vmax.f32 %v1563_v18, 0.0 }
 0x3de   : > { %v1569_v23 = vadd.f32 %v1568_v22, %v2839_v58  ;;  %v1606_v26 = vmax.f32 %v1565_v20, 0.0 }
 0x3df   : > { %v1607_v24 = vmax.f32 %v1567_v28, 0.0 }
 0x3e0   : > { %v1608_v30 = vmax.f32 %v1569_v23, 0.0 }
 0x3e1   : > { %v1625_v31 = vpack.c.bf16 %v1607_v24, %v1605_v29 }
 0x3e2   : > { %v1626_v32 = vpack.c.bf16 %v1608_v30, %v1606_v26  ;;  %v1572_v33 = vpop.f32.mrb[60].mxu1 }
 0x3e3   : > { %v1573_v34 = vadd.f32 %v1572_v33, %v2836_v57  ;;  %v1574_v35 = vpop.f32.mrb[61].mxu1 }
 0x3e4   : > { %v1575_v36 = vadd.f32 %v1574_v35, %v2839_v58  ;;  %v1576_v37 = vpop.f32.mrb[62].mxu1  ;;  %1844 = vmatprep.mubr.bf16.mxu0 %v1626_v32 }
 0x3e5   : > { %v1577_v38 = vadd.f32 %v1576_v37, %v2836_v57  ;;  %v1578_v39 = vpop.f32.mrb[63].mxu1  ;;  %1845 = vmatmul.mubr.bf16.gmra.mrb[88].mxu0 %v1625_v31  ;;  %v1609_v41 = vmax.f32 %v1573_v34, 0.0  ;;  %v2879_v57 = vld [vmem:[%s2973_s6] ss:$0 sm:$0xff] }
 0x3e6   : > { %v1579_v40 = vadd.f32 %v1578_v39, %v2839_v58  ;;  %v1610_v43 = vmax.f32 %v1575_v36, 0.0 }
 0x3e7   : > { %v1611_v42 = vmax.f32 %v1577_v38, 0.0 }
 0x3e8   : > { %v1612_v44 = vmax.f32 %v1579_v40, 0.0 }
 0x3e9   : > { %v1627_v45 = vpack.c.bf16 %v1611_v42, %v1609_v41 }
 0x3ea   : > { %v1628_v46 = vpack.c.bf16 %v1612_v44, %v1610_v43 }
 0x3ec   : > { %1852 = vmatprep.mubr.bf16.mxu0 %v1628_v46 }
 0x3ed   : > { %1853 = vmatmul.mubr.bf16.gmra.mrb[92].mxu0 %v1627_v45 }
 0x488   : > { %v2121_v47 = vpop.f32.mrb[64].mxu0 }
 0x489   : > { %v2122_v48 = vpop.f32.mrb[65].mxu0 }
 0x48a   : > { %v2123_v53 = vadd.f32 %v2122_v48, %v2121_v47  ;;  %v2124_v58 = vpop.f32.mrb[66].mxu0 }
 0x48b   : > { %v2125_v54 = vpop.f32.mrb[67].mxu0 }
 0x48c   : > { %v1799_v49 = vadd.f32 %v2123_v53, %v2879_v57  ;;  %v2126_v50 = vadd.f32 %v2125_v54, %v2124_v58 }
 0x48e   : > { %1861 = vst [vmem:[%s2882_s9] sm:$0xff] %v1799_v49  ;;  %v1802_v51 = vadd.f32 %v2126_v50, %v2879_v57 }
 0x490   : > { %1862 = vst [vmem:[%s2882_s9 + $0x8] sm:$0xff] %v1802_v51  ;;  %v2127_v52 = vpop.f32.mrb[68].mxu0 }
 0x491   : > { %v2128_v55 = vpop.f32.mrb[69].mxu0 }
 0x492   : > { %v2129_v56 = vadd.f32 %v2128_v55, %v2127_v52  ;;  %v2130_v0 = vpop.f32.mrb[70].mxu0 }
 0x493   : > { %v2131_v1 = vpop.f32.mrb[71].mxu0 }
 0x494   : > { %v1807_v59 = vadd.f32 %v2129_v56, %v2879_v57  ;;  %v2132_v60 = vadd.f32 %v2131_v1, %v2130_v0 }
 0x496   : > { %1863 = vst [vmem:[%s2882_s9 + $0x10] sm:$0xff] %v1807_v59  ;;  %v1810_v61 = vadd.f32 %v2132_v60, %v2879_v57 }
 0x498   : > { %1864 = vst [vmem:[%s2882_s9 + $0x18] sm:$0xff] %v1810_v61  ;;  %v2133_v62 = vpop.f32.mrb[72].mxu0 }
 0x499   : > { %v2134_v63 = vpop.f32.mrb[73].mxu0 }
 0x49a   : > { %v2135_v2 = vadd.f32 %v2134_v63, %v2133_v62  ;;  %v2136_v3 = vpop.f32.mrb[74].mxu0 }
 0x49b   : > { %v2137_v4 = vpop.f32.mrb[75].mxu0 }
 0x49c   : > { %v1815_v5 = vadd.f32 %v2135_v2, %v2879_v57  ;;  %v2138_v6 = vadd.f32 %v2137_v4, %v2136_v3 }
 0x49e   : > { %1865 = vst [vmem:[%s2882_s9 + $0x20] sm:$0xff] %v1815_v5  ;;  %v1818_v7 = vadd.f32 %v2138_v6, %v2879_v57 }
 0x4a0   : > { %1866 = vst [vmem:[%s2882_s9 + $0x28] sm:$0xff] %v1818_v7  ;;  %v2139_v25 = vpop.f32.mrb[76].mxu0 }
 0x4a1   : > { %v2140_v8 = vpop.f32.mrb[77].mxu0 }
 0x4a2   : > { %v2141_v9 = vadd.f32 %v2140_v8, %v2139_v25  ;;  %v2142_v27 = vpop.f32.mrb[78].mxu0 }
 0x4a3   : > { %v2143_v10 = vpop.f32.mrb[79].mxu0 }
 0x4a4   : > { %v1823_v11 = vadd.f32 %v2141_v9, %v2879_v57  ;;  %v2144_v12 = vadd.f32 %v2143_v10, %v2142_v27 }
 0x4a6   : > { %1867 = vst [vmem:[%s2882_s9 + $0x30] sm:$0xff] %v1823_v11  ;;  %v1826_v13 = vadd.f32 %v2144_v12, %v2879_v57 }
 0x4a8   : > { %1868 = vst [vmem:[%s2882_s9 + $0x38] sm:$0xff] %v1826_v13  ;;  %v2145_v14 = vpop.f32.mrb[80].mxu0 }
 0x4a9   : > { %v2146_v15 = vpop.f32.mrb[81].mxu0 }
 0x4aa   : > { %v2147_v16 = vadd.f32 %v2146_v15, %v2145_v14  ;;  %v2148_v17 = vpop.f32.mrb[82].mxu0 }
 0x4ab   : > { %v2149_v18 = vpop.f32.mrb[83].mxu0 }
 0x4ac   : > { %v1831_v19 = vadd.f32 %v2147_v16, %v2879_v57  ;;  %v2150_v20 = vadd.f32 %v2149_v18, %v2148_v17 }
 0x4ae   : > { %1869 = vst [vmem:[%s2882_s9 + $0x40] sm:$0xff] %v1831_v19  ;;  %v1834_v21 = vadd.f32 %v2150_v20, %v2879_v57 }
 0x4b0   : > { %1870 = vst [vmem:[%s2882_s9 + $0x48] sm:$0xff] %v1834_v21  ;;  %v2151_v28 = vpop.f32.mrb[84].mxu0 }
 0x4b1   : > { %v2152_v22 = vpop.f32.mrb[85].mxu0 }
 0x4b2   : > { %v2153_v23 = vadd.f32 %v2152_v22, %v2151_v28  ;;  %v2154_v29 = vpop.f32.mrb[86].mxu0 }
 0x4b3   : > { %v2155_v24 = vpop.f32.mrb[87].mxu0 }
 0x4b4   : > { %v1839_v26 = vadd.f32 %v2153_v23, %v2879_v57  ;;  %v2156_v30 = vadd.f32 %v2155_v24, %v2154_v29 }
 0x4b6   : > { %1871 = vst [vmem:[%s2882_s9 + $0x50] sm:$0xff] %v1839_v26  ;;  %v1842_v31 = vadd.f32 %v2156_v30, %v2879_v57 }
 0x4b8   : > { %1872 = vst [vmem:[%s2882_s9 + $0x58] sm:$0xff] %v1842_v31  ;;  %v2157_v32 = vpop.f32.mrb[88].mxu0 }
 0x4b9   : > { %v2158_v33 = vpop.f32.mrb[89].mxu0 }
 0x4ba   : > { %v2159_v34 = vadd.f32 %v2158_v33, %v2157_v32  ;;  %v2160_v35 = vpop.f32.mrb[90].mxu0 }
 0x4bb   : > { %v2161_v36 = vpop.f32.mrb[91].mxu0 }
 0x4bc   : > { %v1847_v37 = vadd.f32 %v2159_v34, %v2879_v57  ;;  %v2162_v38 = vadd.f32 %v2161_v36, %v2160_v35 }
 0x4be   : > { %1873 = vst [vmem:[%s2882_s9 + $0x60] sm:$0xff] %v1847_v37  ;;  %v1850_v39 = vadd.f32 %v2162_v38, %v2879_v57 }
 0x4c0   : > { %1874 = vst [vmem:[%s2882_s9 + $0x68] sm:$0xff] %v1850_v39  ;;  %v2163_v40 = vpop.f32.mrb[92].mxu0 }
 0x4c1   : > { %v2164_v41 = vpop.f32.mrb[93].mxu0 }
 0x4c2   : > { %v2165_v42 = vadd.f32 %v2164_v41, %v2163_v40  ;;  %v2166_v43 = vpop.f32.mrb[94].mxu0 }
 0x4c3   : > { %v2167_v44 = vpop.f32.mrb[95].mxu0 }
 0x4c4   : > { %v1855_v45 = vadd.f32 %v2165_v42, %v2879_v57  ;;  %v2168_v46 = vadd.f32 %v2167_v44, %v2166_v43 }
 0x4c6   : > { %1875 = vst [vmem:[%s2882_s9 + $0x70] sm:$0xff] %v1855_v45  ;;  %v1858_v47 = vadd.f32 %v2168_v46, %v2879_v57 }
 0x4c8   : > { %1876 = vst [vmem:[%s2882_s9 + $0x78] sm:$0xff] %v1858_v47 }
 0x4c9   : > { %2428 = shalt.err (!%p2425_p7)
}
 0x4ca   : > { %s2429_s22 = scalar_lea.hbm %s2917_s19, 2048  ;;  %s2433_s8 = scalar_lea.hbm %s2974_s7, 8192 }
 0x4cb   : > { %p2430_p8 = scmp.ne.s32.totalorder %s2917_s19, %s2429_s22  ;;  %p2434_p1 = scmp.lt.u32.totalorder %s2917_s19, %s2974_s7 }
 0x4cc   : > { %p2435_p0 = scmp.lt.u32.totalorder %s2433_s8, %s2429_s22  ;;  %p2437_p6 = scmp.lt.u32.totalorder %s2429_s22, %s2917_s19 }
 0x4cd   : > { %p2431_p11 = pnand %p2430_p8, %p2985_p9 }
 0x4ce   : > { %p2436_p5 = por %p2435_p0, %p2434_p1 }
 0x4cf   : > { %p2432_p13 = pneg %p2431_p11 }
 0x4d0   : > { %p2438_p10 = por %p2437_p6, %p2436_p5 }
 0x4d2   : > { %p2439_p12 = pnand %p2438_p10, %p2432_p13 }
 0x4d4   : > { %2442 = shalt.err (!%p2439_p12)
}
 0x4d5   : > { %s2488_s18 = smov 128   ;;  %s2489_s16 = smov 8  }
 0x4d6   : > { %2173 = dma.vmem_to_hbm [thread:$0]  (%p2985_p9), %s2919_s17, 2048, %s2917_s19, %s2926_s28, %s2488_s18, %s2488_s18, %s2489_s16  }
 0x4d7 PF: > { %p2185_p2 = scmp.ge.s32.totalorder %s2481_s27, 2  ;;  %s1906_s20 = sand.u32 1, %s2469_s24  }
 0x4d8   : > { %p2986_p3 = scmp.ne.s32.totalorder %s2979_s12, 0  ;;  %s1907_s15 = scalar_lea.sflag [#allocation4], %s1906_s20 }
 0x4da   : > { %p2180_p4 = pnand %p2185_p2, %p2986_p3 }
 0x4dc   : > { %2464 = dma.done.wait (!%p2180_p4), %s1907_s15, 2048  }
 0x4dd   : > { %2466 = vsyncadd (!%p2180_p4), %s1907_s15, 4294965248  ;;  %p18_p7 = scmp.ge.s32.totalorder %s2555_s30, 6   ;;  %s2987_s24 = smov %s2473_s25 }
 0x4de   : > { %s2988_s25 = smov %s2477_s26  ;;  %s2989_s26 = smov %s2566_s10 }
 0x4df   : > { %s2990_s27 = smov %s2555_s30  ;;  %20 = sbr.rel (!%p18_p7) target bundleno = 4 (0x4), region = 92 }
 0x4e6   :  { %1912 = vsyncpa [#allocation3], 1 }
 0x4e7   :  { %1914 = vsyncpa [#allocation3 + $0x1], 1 }
 0x4e8   :  { %1915 = vsyncpa [#allocation4], 1 }
 0x4e9   :  { %1917 = vsyncpa [#allocation4 + $0x1], 1 }

</bundles_post_ra>
